<compile_context>
chip_gen: v5e
topology: v5e:2x2
jax: 0.10.0
libtpu: 0.0.40
codegen_flags: <defaults>
</compile_context>

<pallas_src>
import functools

import jax
import jax.numpy as jnp
from jax.experimental import pallas as pl
from jax.experimental.pallas import tpu as pltpu

_LANE = 128                       # feature dims padded to multiples of the lane width
_SUBLANE = 16                     # batch-tile alignment (bf16 sublane packing)
_VMEM_BUDGET = 48 * 1024 * 1024   # headroom vs v7x's 64 MiB physical VMEM


def _round_up(x, m):
    return (x + m - 1) // m * m


def mlp_kernel(x_ref, w1_ref, b1_ref, w2_ref, b2_ref, w3_ref, b3_ref, o_ref):
    # Layer 1: bf16 MXU matmul, f32 accumulate; bias + ReLU in f32 on the VPU.
    h = jnp.dot(x_ref[...], w1_ref[...], preferred_element_type=jnp.float32)
    h = jnp.maximum(h + b1_ref[...], 0.0)
    # Layer 2 (downcast the activation only for the next MXU feed).
    h = jnp.dot(h.astype(w2_ref.dtype), w2_ref[...], preferred_element_type=jnp.float32)
    h = jnp.maximum(h + b2_ref[...], 0.0)
    # Layer 3: Linear, no activation.
    out = jnp.dot(h.astype(w3_ref.dtype), w3_ref[...], preferred_element_type=jnp.float32)
    o_ref[...] = (out + b3_ref[...]).astype(o_ref.dtype)


@functools.partial(jax.jit, static_argnames=("block_m", "compute_dtype"))
def mlp_forward(x, w1, b1, w2, b2, w3, b3, *, block_m=256, compute_dtype=jnp.bfloat16):
    """Fused MLP: relu(relu(x@w1+b1)@w2+b2)@w3+b3.

    x: (M, input_dim) f32.  w_i: (in, out) (already transposed from torch's (out, in)).
    b_i: (out,).  Returns (M, output_dim) f32.
    """
    M, d_in = x.shape
    d_h = w1.shape[1]
    d_out = w3.shape[1]
    assert w1.shape == (d_in, d_h) and w2.shape == (d_h, d_h) and w3.shape == (d_h, d_out)

    # ---- Lane-dense padding: all feature dims -> multiples of 128. ----------------
    d_in_p = _round_up(d_in, _LANE)
    d_h_p = _round_up(d_h, _LANE)
    d_out_p = _round_up(d_out, _LANE)

    # ---- Batch tile selection (multiple of 16, shrunk to fit VMEM). ---------------
    block_m = max(_SUBLANE, min(block_m, _round_up(M, _SUBLANE)))
    block_m = _round_up(block_m, _SUBLANE)

    cd_bytes = jnp.dtype(compute_dtype).itemsize

    def vmem_bytes(bm):
        x_tile = bm * d_in_p * cd_bytes * 2                      # double-buffered input tile
        o_tile = bm * d_out_p * 4 * 2                            # double-buffered f32 output tile
        weights = (d_in_p * d_h_p + d_h_p * d_h_p + d_h_p * d_out_p) * cd_bytes * 2
        biases = (2 * d_h_p + d_out_p) * 4 * 2
        inter = 2 * bm * d_h_p * 4                               # live f32 h1/h2 values
        return x_tile + o_tile + weights + biases + inter

    while vmem_bytes(block_m) > _VMEM_BUDGET and block_m > _SUBLANE:
        block_m = _round_up(block_m // 2, _SUBLANE)

    M_pad = _round_up(M, block_m)
    # v7x megacore: prefer a "parallel" grid of length >= 2 so both TensorCores work.
    if M_pad // block_m < 2 and M_pad >= 2 * _SUBLANE:
        block_m = _round_up(pl.cdiv(M_pad, 2), _SUBLANE)
        M_pad = _round_up(M, block_m)
    grid = (M_pad // block_m,)

    # ---- Pad & cast operands (zero padding is exact for Linear+ReLU). -------------
    cd = compute_dtype
    x_p = jnp.zeros((M_pad, d_in_p), cd).at[:M, :d_in].set(x.astype(cd))
    w1_p = jnp.zeros((d_in_p, d_h_p), cd).at[:d_in, :d_h].set(w1.astype(cd))
    w2_p = jnp.zeros((d_h_p, d_h_p), cd).at[:d_h, :d_h].set(w2.astype(cd))
    w3_p = jnp.zeros((d_h_p, d_out_p), cd).at[:d_h, :d_out].set(w3.astype(cd))
    b1_p = jnp.zeros((1, d_h_p), jnp.float32).at[0, :d_h].set(b1.reshape(-1).astype(jnp.float32))
    b2_p = jnp.zeros((1, d_h_p), jnp.float32).at[0, :d_h].set(b2.reshape(-1).astype(jnp.float32))
    b3_p = jnp.zeros((1, d_out_p), jnp.float32).at[0, :d_out].set(b3.reshape(-1).astype(jnp.float32))

    flops = 2 * M_pad * (d_in_p * d_h_p + d_h_p * d_h_p + d_h_p * d_out_p)
    bytes_accessed = (
        (x_p.size + w1_p.size + w2_p.size + w3_p.size) * cd_bytes
        + (b1_p.size + b2_p.size + b3_p.size) * 4
        + M_pad * d_out_p * 4
    )

    out_p = pl.pallas_call(
        mlp_kernel,
        out_shape=jax.ShapeDtypeStruct((M_pad, d_out_p), jnp.float32),
        grid_spec=pltpu.PrefetchScalarGridSpec(
            num_scalar_prefetch=0,
            grid=grid,
            in_specs=[
                # x: tiled along batch, lane-dense feature dim.
                pl.BlockSpec((block_m, d_in_p), lambda i: (i, 0)),
                # Weights / biases: full arrays, VMEM-resident for every grid step
                # (constant index_map -> DMA'd once, reused across the whole grid).
                pl.BlockSpec((d_in_p, d_h_p), lambda i: (0, 0)),
                pl.BlockSpec((1, d_h_p), lambda i: (0, 0)),
                pl.BlockSpec((d_h_p, d_h_p), lambda i: (0, 0)),
                pl.BlockSpec((1, d_h_p), lambda i: (0, 0)),
                pl.BlockSpec((d_h_p, d_out_p), lambda i: (0, 0)),
                pl.BlockSpec((1, d_out_p), lambda i: (0, 0)),
            ],
            out_specs=pl.BlockSpec((block_m, d_out_p), lambda i: (i, 0)),
        ),
        compiler_params=pltpu.CompilerParams(
            dimension_semantics=("parallel",),
            vmem_limit_bytes=int(
                min(max(vmem_bytes(block_m) * 5 // 4, 16 * 1024 * 1024), 64 * 1024 * 1024)
            ),
        ),
        cost_estimate=pl.CostEstimate(
            flops=flops, transcendentals=0, bytes_accessed=bytes_accessed
        ),
    )(x_p, w1_p, b1_p, w2_p, b2_p, w3_p, b3_p)

    return out_p[:M, :d_out]


def init_mlp_params(key, input_dim, output_dim, hidden_dim):
    """Deterministic init mimicking nn.Linear default (uniform +/- 1/sqrt(fan_in)).
    Weights returned already transposed to (in, out); biases as (out,)."""
    keys = jax.random.split(key, 6)

    def linear(kw, kb, fan_in, fan_out):
        bound = 1.0 / jnp.sqrt(fan_in)
        w = jax.random.uniform(kw, (fan_in, fan_out), jnp.float32, -bound, bound)
        b = jax.random.uniform(kb, (fan_out,), jnp.float32, -bound, bound)
        return w, b

    w1, b1 = linear(keys[0], keys[1], input_dim, hidden_dim)
    w2, b2 = linear(keys[2], keys[3], hidden_dim, hidden_dim)
    w3, b3 = linear(keys[4], keys[5], hidden_dim, output_dim)
    return w1, b1, w2, b2, w3, b3


if __name__ == "__main__":
    # Modest shapes consistent with the module (hidden_dim matches the default 256).
    # batch=512 with block_m=256 -> grid of length 2 (even, megacore-friendly);
    # input/output dims are lane-padded to 128 internally.
    batch, input_dim, hidden_dim, output_dim = 512, 64, 256, 10

    key = jax.random.PRNGKey(0)
    kx, kp = jax.random.split(key)
    x = jax.random.normal(kx, (batch, input_dim), jnp.float32)
    params = init_mlp_params(kp, input_dim, output_dim, hidden_dim)

    out = mlp_forward(x, *params, block_m=256)
    out = jax.block_until_ready(out)
    assert out.shape == (batch, output_dim)

    # Pure-JAX reference using the same bf16-matmul / f32-accumulate precision path.
    w1, b1, w2, b2, w3, b3 = params
    bf = jnp.bfloat16
    ref = jnp.maximum(
        jnp.dot(x.astype(bf), w1.astype(bf), preferred_element_type=jnp.float32) + b1, 0.0)
    ref = jnp.maximum(
        jnp.dot(ref.astype(bf), w2.astype(bf), preferred_element_type=jnp.float32) + b2, 0.0)
    ref = jnp.dot(ref.astype(bf), w3.astype(bf), preferred_element_type=jnp.float32) + b3

    max_err = float(jnp.max(jnp.abs(out - ref)))
    assert max_err < 1e-2, f"max abs error {max_err}"
    print("KERNEL_OK")
</pallas_src>

<mosaic_0001>
module attributes {stable_mosaic.version = 11 : i64} {
  func.func @mlp_kernel(%arg0: i32, %arg1: memref<256x128xbf16, #tpu.memory_space<vmem>>, %arg2: memref<128x256xbf16, #tpu.memory_space<vmem>>, %arg3: memref<1x256xf32, #tpu.memory_space<vmem>>, %arg4: memref<256x256xbf16, #tpu.memory_space<vmem>>, %arg5: memref<1x256xf32, #tpu.memory_space<vmem>>, %arg6: memref<256x128xbf16, #tpu.memory_space<vmem>>, %arg7: memref<1x128xf32, #tpu.memory_space<vmem>>, %arg8: memref<256x128xf32, #tpu.memory_space<vmem>>) attributes {dimension_semantics = [#tpu.dimension_semantics<parallel>], iteration_bounds = array<i64: 2>, scalar_prefetch = 0 : i64, scratch_operands = 0 : i64, tpu.core_type = #tpu.core_type<tc>, window_params = [{transform_indices = @transform_0, window_bounds = array<i64: 256, 128>}, {pipeline_mode = #tpu.pipeline_mode<synchronous>, transform_indices = @transform_1, window_bounds = array<i64: 128, 256>}, {pipeline_mode = #tpu.pipeline_mode<synchronous>, transform_indices = @transform_2, window_bounds = array<i64: 1, 256>}, {pipeline_mode = #tpu.pipeline_mode<synchronous>, transform_indices = @transform_3, window_bounds = array<i64: 256, 256>}, {pipeline_mode = #tpu.pipeline_mode<synchronous>, transform_indices = @transform_4, window_bounds = array<i64: 1, 256>}, {pipeline_mode = #tpu.pipeline_mode<synchronous>, transform_indices = @transform_5, window_bounds = array<i64: 256, 128>}, {pipeline_mode = #tpu.pipeline_mode<synchronous>, transform_indices = @transform_6, window_bounds = array<i64: 1, 128>}, {transform_indices = @transform_7, window_bounds = array<i64: 256, 128>}]} {
    %c0 = arith.constant 0 : index
    %c0_0 = arith.constant 0 : index
    %0 = vector.load %arg1[%c0, %c0_0] : memref<256x128xbf16, #tpu.memory_space<vmem>>, vector<256x128xbf16>
    %c0_1 = arith.constant 0 : index
    %c0_2 = arith.constant 0 : index
    %1 = vector.load %arg2[%c0_1, %c0_2] : memref<128x256xbf16, #tpu.memory_space<vmem>>, vector<128x256xbf16>
    %cst = arith.constant dense<0.000000e+00> : vector<256x256xf32>
    %2 = tpu.matmul %0, %1, %cst {dimension_numbers = #tpu.dot_dimension_numbers<[1], [0], [0], [1], [0, 0, 1, 1], [], []>} : vector<256x128xbf16>, vector<128x256xbf16>, vector<256x256xf32> -> vector<256x256xf32>
    %c0_3 = arith.constant 0 : index
    %c0_4 = arith.constant 0 : index
    %3 = vector.load %arg3[%c0_3, %c0_4] : memref<1x256xf32, #tpu.memory_space<vmem>>, vector<1x256xf32>
    %4 = vector.broadcast %3 : vector<1x256xf32> to vector<256x256xf32>
    %5 = arith.addf %2, %4 : vector<256x256xf32>
    %cst_5 = arith.constant 0.000000e+00 : f32
    %6 = vector.broadcast %cst_5 : f32 to vector<256x256xf32>
    %7 = arith.maximumf %5, %6 : vector<256x256xf32>
    %8 = arith.truncf %7 : vector<256x256xf32> to vector<256x256xbf16>
    %c0_6 = arith.constant 0 : index
    %c0_7 = arith.constant 0 : index
    %9 = vector.load %arg4[%c0_6, %c0_7] : memref<256x256xbf16, #tpu.memory_space<vmem>>, vector<256x256xbf16>
    %cst_8 = arith.constant dense<0.000000e+00> : vector<256x256xf32>
    %10 = tpu.matmul %8, %9, %cst_8 {dimension_numbers = #tpu.dot_dimension_numbers<[1], [0], [0], [1], [0, 0, 1, 1], [], []>} : vector<256x256xbf16>, vector<256x256xbf16>, vector<256x256xf32> -> vector<256x256xf32>
    %c0_9 = arith.constant 0 : index
    %c0_10 = arith.constant 0 : index
    %11 = vector.load %arg5[%c0_9, %c0_10] : memref<1x256xf32, #tpu.memory_space<vmem>>, vector<1x256xf32>
    %12 = vector.broadcast %11 : vector<1x256xf32> to vector<256x256xf32>
    %13 = arith.addf %10, %12 : vector<256x256xf32>
    %cst_11 = arith.constant 0.000000e+00 : f32
    %14 = vector.broadcast %cst_11 : f32 to vector<256x256xf32>
    %15 = arith.maximumf %13, %14 : vector<256x256xf32>
    %16 = arith.truncf %15 : vector<256x256xf32> to vector<256x256xbf16>
    %c0_12 = arith.constant 0 : index
    %c0_13 = arith.constant 0 : index
    %17 = vector.load %arg6[%c0_12, %c0_13] : memref<256x128xbf16, #tpu.memory_space<vmem>>, vector<256x128xbf16>
    %cst_14 = arith.constant dense<0.000000e+00> : vector<256x128xf32>
    %18 = tpu.matmul %16, %17, %cst_14 {dimension_numbers = #tpu.dot_dimension_numbers<[1], [0], [0], [1], [0, 0, 1, 1], [], []>} : vector<256x256xbf16>, vector<256x128xbf16>, vector<256x128xf32> -> vector<256x128xf32>
    %c0_15 = arith.constant 0 : index
    %c0_16 = arith.constant 0 : index
    %19 = vector.load %arg7[%c0_15, %c0_16] : memref<1x128xf32, #tpu.memory_space<vmem>>, vector<1x128xf32>
    %20 = vector.broadcast %19 : vector<1x128xf32> to vector<256x128xf32>
    %21 = arith.addf %18, %20 : vector<256x128xf32>
    %c0_17 = arith.constant 0 : index
    %c0_18 = arith.constant 0 : index
    %22 = vector.load %arg8[%c0_17, %c0_18] : memref<256x128xf32, #tpu.memory_space<vmem>>, vector<256x128xf32>
    tpu.vector_store %arg8[%c0_17, %c0_18], %21 {strides = array<i32>} : memref<256x128xf32, #tpu.memory_space<vmem>>, vector<256x128xf32>,
    return
  }
  func.func @transform_0(%arg0: i32) -> (i32, i32) {
    %c0_i32 = arith.constant 0 : i32
    %c0_i32_0 = arith.constant 0 : i32
    return %arg0, %c0_i32 : i32, i32
  }
  func.func @transform_1(%arg0: i32) -> (i32, i32) {
    %c0_i32 = arith.constant 0 : i32
    %c0_i32_0 = arith.constant 0 : i32
    %c0_i32_1 = arith.constant 0 : i32
    return %c0_i32, %c0_i32_0 : i32, i32
  }
  func.func @transform_2(%arg0: i32) -> (i32, i32) {
    %c0_i32 = arith.constant 0 : i32
    %c0_i32_0 = arith.constant 0 : i32
    %c0_i32_1 = arith.constant 0 : i32
    return %c0_i32, %c0_i32_0 : i32, i32
  }
  func.func @transform_3(%arg0: i32) -> (i32, i32) {
    %c0_i32 = arith.constant 0 : i32
    %c0_i32_0 = arith.constant 0 : i32
    %c0_i32_1 = arith.constant 0 : i32
    return %c0_i32, %c0_i32_0 : i32, i32
  }
  func.func @transform_4(%arg0: i32) -> (i32, i32) {
    %c0_i32 = arith.constant 0 : i32
    %c0_i32_0 = arith.constant 0 : i32
    %c0_i32_1 = arith.constant 0 : i32
    return %c0_i32, %c0_i32_0 : i32, i32
  }
  func.func @transform_5(%arg0: i32) -> (i32, i32) {
    %c0_i32 = arith.constant 0 : i32
    %c0_i32_0 = arith.constant 0 : i32
    %c0_i32_1 = arith.constant 0 : i32
    return %c0_i32, %c0_i32_0 : i32, i32
  }
  func.func @transform_6(%arg0: i32) -> (i32, i32) {
    %c0_i32 = arith.constant 0 : i32
    %c0_i32_0 = arith.constant 0 : i32
    %c0_i32_1 = arith.constant 0 : i32
    return %c0_i32, %c0_i32_0 : i32, i32
  }
  func.func @transform_7(%arg0: i32) -> (i32, i32) {
    %c0_i32 = arith.constant 0 : i32
    %c0_i32_0 = arith.constant 0 : i32
    return %arg0, %c0_i32 : i32, i32
  }
}

</mosaic_0001>

<bundles_post_ra>
// kernel: mlp_forward.1
= control target key start
LH: loop header
LB: loop body
LE: loop exit
PB: predicated region body
PF: predicated region fallthrough
CT: control target
= control target key end

     0   :  { %s2302_s24 = smov 0   ;;  %s3072_s0 = inlined_call_operand.vmem [shape: bf16[512,128], index: 0, kind: input, shape index: {}]   ;;  %s3073_s1 = inlined_call_operand.vmem [shape: bf16[128,256], index: 1, kind: input, shape index: {}]   ;;  %s3074_s2 = inlined_call_operand.vmem [shape: f32[1,256], index: 2, kind: input, shape index: {}]   ;;  %s3075_s3 = inlined_call_operand.vmem [shape: bf16[256,256], index: 3, kind: input, shape index: {}]   ;;  %s3076_s4 = inlined_call_operand.vmem [shape: f32[1,256], index: 4, kind: input, shape index: {}]   ;;  %s3077_s5 = inlined_call_operand.vmem [shape: bf16[256,128], index: 5, kind: input, shape index: {}]   ;;  %s3078_s6 = inlined_call_operand.vmem [shape: f32[1,128], index: 6, kind: input, shape index: {}]   ;;  %s3079_s7 = inlined_call_operand.vmem [shape: f32[512,128], index: 7, kind: output, shape index: {}]  }
   0x1 LB: > { %s1834_s25 = sadd.s32 4294967295, %s2260_s24   ;;  %p1838_p0 = scmp.ge.s32.totalorder %s2260_s24, 1  ;;  %s2260_s24 = sphi %s2302_s24, %s17_s24  }
   0x2   : > { %p238_p1 = scmp.lt.s32.totalorder %s2260_s24, 3 }
   0x4   : > { %p239_p2 = pnand %p1838_p0, %p238_p1 }
   0x5   : > { %s1839_s22 = sshll.u32 (!%p239_p2), %s1834_s25, 5 }
   0x6   : > { %242 = sbr.rel (%p239_p2) target bundleno = 826 (0x33a), region = 48  ;;  %p271_p3 = scmp.lt.s32.totalorder (!%p239_p2), %s1839_s22, 63 }
   0xb   : > { %v1965_v0 = vld [vmem:[%s3073_s1 + $0x70] sm:$0xf]  ;;  %v2196_v1 = vld [vmem:[%s3073_s1 + $0x74] sm:$0xf0]  ;;  %v2195_v2 = vld [vmem:[%s3073_s1 + $0x74] sm:$0xf] }
   0xc   : > { %v1966_v3 = vor.u32 %v2196_v1, %v1965_v0  ;;  %v1967_v4 = vld [vmem:[%s3073_s1 + $0x78] sm:$0xf0]  ;;  %v1957_v5 = vld [vmem:[%s3073_s1 + $0x60] sm:$0xf]  ;;  %v2194_v6 = vld [vmem:[%s3073_s1 + $0x64] sm:$0xf0] }
   0xd   : > { %v1970_v7 = vor.u32 %v2195_v2, %v1967_v4  ;;  %v2193_v8 = vld [vmem:[%s3073_s1 + $0x64] sm:$0xf]  ;;  %v1959_v9 = vld [vmem:[%s3073_s1 + $0x68] sm:$0xf0]  ;;  %v1958_v10 = vor.u32 %v2194_v6, %v1957_v5  ;;  %v1949_v12 = vld [vmem:[%s3073_s1 + $0x50] sm:$0xf] }
   0xe   : > { %512 = vmatpush.bf16.msra.mxu0 %v1966_v3  ;;  %v1962_v11 = vor.u32 %v2193_v8, %v1959_v9  ;;  %v2192_v13 = vld [vmem:[%s3073_s1 + $0x54] sm:$0xf0]  ;;  %v2191_v14 = vld [vmem:[%s3073_s1 + $0x54] sm:$0xf]  ;;  %v1951_v15 = vld [vmem:[%s3073_s1 + $0x58] sm:$0xf0] }
   0xf   : > { %601 = vmatpush.bf16.msra.mxu1 %v1970_v7  ;;  %v1950_v16 = vor.u32 %v2192_v13, %v1949_v12  ;;  %v1954_v17 = vor.u32 %v2191_v14, %v1951_v15  ;;  %v1941_v18 = vld [vmem:[%s3073_s1 + $0x40] sm:$0xf]  ;;  %v2190_v19 = vld [vmem:[%s3073_s1 + $0x44] sm:$0xf0]  ;;  %v2189_v20 = vld [vmem:[%s3073_s1 + $0x44] sm:$0xf] }
  0x10   : > { %v1943_v21 = vld [vmem:[%s3073_s1 + $0x48] sm:$0xf0]  ;;  %v1942_v22 = vor.u32 %v2190_v19, %v1941_v18  ;;  %v1933_v24 = vld [vmem:[%s3073_s1 + $0x30] sm:$0xf]  ;;  %v2188_v25 = vld [vmem:[%s3073_s1 + $0x34] sm:$0xf0] }
  0x11   : > { %v1946_v23 = vor.u32 %v2189_v20, %v1943_v21  ;;  %v2187_v26 = vld [vmem:[%s3073_s1 + $0x34] sm:$0xf]  ;;  %v1935_v27 = vld [vmem:[%s3073_s1 + $0x38] sm:$0xf0]  ;;  %v1934_v28 = vor.u32 %v2188_v25, %v1933_v24  ;;  %v1925_v30 = vld [vmem:[%s3073_s1 + $0x20] sm:$0xf] }
  0x12   : > { %513 = vmatpush.bf16.msra.mxu0 %v1958_v10  ;;  %v1938_v29 = vor.u32 %v2187_v26, %v1935_v27  ;;  %v2186_v31 = vld [vmem:[%s3073_s1 + $0x24] sm:$0xf0]  ;;  %v2185_v32 = vld [vmem:[%s3073_s1 + $0x24] sm:$0xf]  ;;  %v1927_v33 = vld [vmem:[%s3073_s1 + $0x28] sm:$0xf0] }
  0x13   : > { %602 = vmatpush.bf16.msra.mxu1 %v1962_v11  ;;  %v1926_v34 = vor.u32 %v2186_v31, %v1925_v30  ;;  %v1930_v35 = vor.u32 %v2185_v32, %v1927_v33  ;;  %v1917_v36 = vld [vmem:[%s3073_s1 + $0x10] sm:$0xf]  ;;  %v2184_v37 = vld [vmem:[%s3073_s1 + $0x14] sm:$0xf0]  ;;  %s3081_s22 = smov (!%p271_p3, %s1839_s22), 63 }
  0x14   : > { %v2183_v38 = vld [vmem:[%s3073_s1 + $0x14] sm:$0xf]  ;;  %v1919_v39 = vld [vmem:[%s3073_s1 + $0x18] sm:$0xf0]  ;;  %v1918_v40 = vor.u32 %v2184_v37, %v1917_v36  ;;  %v1909_v41 = vld [vmem:[%s3073_s1] sm:$0xf] }
  0x15   : > { %v1922_v42 = vor.u32 %v2183_v38, %v1919_v39  ;;  %v2182_v43 = vld [vmem:[%s3073_s1 + $0x4] sm:$0xf0]  ;;  %v2181_v44 = vld [vmem:[%s3073_s1 + $0x4] sm:$0xf]  ;;  %s1840_s26 = sshll.u32 %s3081_s22, 2  ;;  %s1842_s12 = sshll.u32 %s3081_s22, 3 }
  0x16   : > { %514 = vmatpush.bf16.msra.mxu0 %v1950_v16  ;;  %v1911_v45 = vld [vmem:[%s3073_s1 + $0x8] sm:$0xf0]  ;;  %v2211_v46 = vld [vmem:[%s3075_s3 + $0x74] sm:$0xf]  ;;  %v2031_v47 = vld [vmem:[%s3075_s3 + $0x78] sm:$0xf0]  ;;  %v1910_v50 = vor.u32 %v2182_v43, %v1909_v41  ;;  %s2426_s15 = scalar_lea.vmem %s3072_s0, %s1840_s26  ;;  %s2983_s16 = scalar_lea.vmem %s3079_s7, %s1842_s12 }
  0x17   : > { %603 = vmatpush.bf16.msra.mxu1 %v1954_v17  ;;  %v2227_v48 = vld [vmem:[%s3075_s3 + $0xf4] sm:$0xf]  ;;  %v2095_v49 = vld [vmem:[%s3075_s3 + $0xf8] sm:$0xf0]  ;;  %v1914_v51 = vor.u32 %v2181_v44, %v1911_v45  ;;  %v2034_v52 = vor.u32 %v2211_v46, %v2031_v47  ;;  %v2165_v54 = vld [vmem:[%s2426_s15] sm:$0xff] }
  0x18   : > { %v2098_v53 = vor.u32 %v2227_v48, %v2095_v49  ;;  %v2209_v55 = vld [vmem:[%s3075_s3 + $0x64] sm:$0xf]  ;;  %v2023_v56 = vld [vmem:[%s3075_s3 + $0x68] sm:$0xf0]  ;;  %v2167_v62 = vld [vmem:[%s2426_s15 + $0x10] sm:$0xff] }
  0x19   : > { %v2225_v57 = vld [vmem:[%s3075_s3 + $0xe4] sm:$0xf]  ;;  %v2026_v58 = vor.u32 %v2209_v55, %v2023_v56  ;;  %v2087_v59 = vld [vmem:[%s3075_s3 + $0xe8] sm:$0xf0]  ;;  %v2207_v63 = vld [vmem:[%s3075_s3 + $0x54] sm:$0xf] }
  0x1a   : > { %515 = vmatpush.bf16.msra.mxu0 %v1942_v22  ;;  %v2090_v60 = vor.u32 %v2225_v57, %v2087_v59  ;;  %v2166_v61 = vld [vmem:[%s2426_s15 + $0x8] sm:$0xff]  ;;  %v2015_v0 = vld [vmem:[%s3075_s3 + $0x58] sm:$0xf0]  ;;  %v2223_v1 = vld [vmem:[%s3075_s3 + $0xd4] sm:$0xf] }
  0x1b   : > { %604 = vmatpush.bf16.msra.mxu1 %v1946_v23  ;;  %v2018_v2 = vor.u32 %v2207_v63, %v2015_v0  ;;  %v2079_v3 = vld [vmem:[%s3075_s3 + $0xd8] sm:$0xf0]  ;;  %v2169_v6 = vld [vmem:[%s2426_s15 + $0x20] sm:$0xff]  ;;  %v2007_v8 = vld [vmem:[%s3075_s3 + $0x48] sm:$0xf0] }
  0x1c   : > { %v2082_v4 = vor.u32 %v2223_v1, %v2079_v3  ;;  %v2168_v5 = vld [vmem:[%s2426_s15 + $0x18] sm:$0xff]  ;;  %v2205_v7 = vld [vmem:[%s3075_s3 + $0x44] sm:$0xf]  ;;  %v2071_v11 = vld [vmem:[%s3075_s3 + $0xc8] sm:$0xf0] }
  0x1d   : > { %v2221_v9 = vld [vmem:[%s3075_s3 + $0xc4] sm:$0xf]  ;;  %v2010_v10 = vor.u32 %v2205_v7, %v2007_v8  ;;  %v2029_v12 = vld [vmem:[%s3075_s3 + $0x70] sm:$0xf]  ;;  %v2212_v13 = vld [vmem:[%s3075_s3 + $0x74] sm:$0xf0] }
  0x1e   : > { %516 = vmatpush.bf16.msra.mxu0 %v1934_v28  ;;  %v2074_v14 = vor.u32 %v2221_v9, %v2071_v11  ;;  %v2030_v15 = vor.u32 %v2212_v13, %v2029_v12  ;;  %v2093_v16 = vld [vmem:[%s3075_s3 + $0xf0] sm:$0xf]  ;;  %v2228_v17 = vld [vmem:[%s3075_s3 + $0xf4] sm:$0xf0]  ;;  %v2170_v19 = vld [vmem:[%s2426_s15 + $0x28] sm:$0xff] }
  0x1f   : > { %605 = vmatpush.bf16.msra.mxu1 %v1938_v29  ;;  %v2094_v18 = vor.u32 %v2228_v17, %v2093_v16  ;;  %v2021_v20 = vld [vmem:[%s3075_s3 + $0x60] sm:$0xf]  ;;  %v2210_v21 = vld [vmem:[%s3075_s3 + $0x64] sm:$0xf0]  ;;  %v2013_v26 = vld [vmem:[%s3075_s3 + $0x50] sm:$0xf] }
  0x20   : > { %984 = vmatpush.bf16.msra.mxu2 %v2030_v15  ;;  %v2085_v22 = vld [vmem:[%s3075_s3 + $0xe0] sm:$0xf]  ;;  %v2022_v23 = vor.u32 %v2210_v21, %v2021_v20  ;;  %v2226_v24 = vld [vmem:[%s3075_s3 + $0xe4] sm:$0xf0]  ;;  %v2208_v27 = vld [vmem:[%s3075_s3 + $0x54] sm:$0xf0] }
  0x21   : > { %1073 = vmatpush.bf16.msra.mxu3 %v2094_v18  ;;  %v2086_v25 = vor.u32 %v2226_v24, %v2085_v22  ;;  %v2077_v28 = vld [vmem:[%s3075_s3 + $0xd0] sm:$0xf]  ;;  %v2014_v29 = vor.u32 %v2208_v27, %v2013_v26  ;;  %v2224_v30 = vld [vmem:[%s3075_s3 + $0xd4] sm:$0xf0]  ;;  %v2005_v32 = vld [vmem:[%s3075_s3 + $0x40] sm:$0xf] }
  0x22   : > { %517 = vmatpush.bf16.msra.mxu0 %v1926_v34  ;;  %v2078_v31 = vor.u32 %v2224_v30, %v2077_v28  ;;  %v2206_v33 = vld [vmem:[%s3075_s3 + $0x44] sm:$0xf0]  ;;  %v2069_v34 = vld [vmem:[%s3075_s3 + $0xc0] sm:$0xf]  ;;  %v1997_v38 = vld [vmem:[%s3075_s3 + $0x30] sm:$0xf] }
  0x23   : > { %606 = vmatpush.bf16.msra.mxu1 %v1930_v35  ;;  %v2222_v35 = vld [vmem:[%s3075_s3 + $0xc4] sm:$0xf0]  ;;  %v2006_v36 = vor.u32 %v2206_v33, %v2005_v32  ;;  %v2204_v39 = vld [vmem:[%s3075_s3 + $0x34] sm:$0xf0]  ;;  %v2171_v41 = vld [vmem:[%s2426_s15 + $0x30] sm:$0xff] }
  0x24   : > { %985 = vmatpush.bf16.msra.mxu2 %v2022_v23  ;;  %v2070_v37 = vor.u32 %v2222_v35, %v2069_v34  ;;  %v2220_v43 = vld [vmem:[%s3075_s3 + $0xb4] sm:$0xf0]  ;;  %v1989_v45 = vld [vmem:[%s3075_s3 + $0x20] sm:$0xf]  ;;  %v2202_v46 = vld [vmem:[%s3075_s3 + $0x24] sm:$0xf0] }
  0x25   : > { %1074 = vmatpush.bf16.msra.mxu3 %v2086_v25  ;;  %v1990_v47 = vor.u32 %v2202_v46, %v1989_v45  ;;  %v2053_v48 = vld [vmem:[%s3075_s3 + $0xa0] sm:$0xf]  ;;  %v2218_v49 = vld [vmem:[%s3075_s3 + $0xa4] sm:$0xf0]  ;;  %v2063_v55 = vld [vmem:[%s3075_s3 + $0xb8] sm:$0xf0] }
  0x26   : > { %518 = vmatpush.bf16.msra.mxu0 %v1918_v40  ;;  %v2061_v40 = vld [vmem:[%s3075_s3 + $0xb0] sm:$0xf]  ;;  %v1973_v63 = vld [vmem:[%s3075_s3] sm:$0xf]  ;;  %v2198_v0 = vld [vmem:[%s3075_s3 + $0x4] sm:$0xf0] }
  0x27   : > { %607 = vmatpush.bf16.msra.mxu1 %v1922_v42  ;;  %v1998_v42 = vor.u32 %v2204_v39, %v1997_v38  ;;  %v2062_v44 = vor.u32 %v2220_v43, %v2061_v40  ;;  %v1981_v57 = vld [vmem:[%s3075_s3 + $0x10] sm:$0xf]  ;;  %v2037_v1 = vld [vmem:[%s3075_s3 + $0x80] sm:$0xf]  ;;  %v2214_v3 = vld [vmem:[%s3075_s3 + $0x84] sm:$0xf0] }
  0x28   : > { %986 = vmatpush.bf16.msra.mxu2 %v2014_v29  ;;  %v2045_v59 = vld [vmem:[%s3075_s3 + $0x90] sm:$0xf]  ;;  %v2244_v7 = vld [vmem:[%s3077_s5 + $0x78] sm:$0xff]  ;;  %v2173_v8 = vld [vmem:[%s2426_s15 + $0x40] sm:$0xff] }
  0x29   : > { %1075 = vmatpush.bf16.msra.mxu3 %v2078_v31  ;;  %v330_v9 = vld [vmem:[%s3074_s2] sm:$0x3]  ;;  %v1991_v15 = vld [vmem:[%s3075_s3 + $0x28] sm:$0xf0]  ;;  %v2217_v17 = vld [vmem:[%s3075_s3 + $0xa4] sm:$0xf] }
  0x2a   : > { %519 = vmatpush.bf16.msra.mxu0 %v1910_v50  ;;  %v2203_v50 = vld [vmem:[%s3075_s3 + $0x34] sm:$0xf]  ;;  %v2590_v12 = vperm.slane %v330_v9, 0  ;;  %v2592_v13 = vperm.slane %v330_v9, 1  ;;  %v2055_v18 = vld [vmem:[%s3075_s3 + $0xa8] sm:$0xf0] }
  0x2b   : > { %608 = vmatpush.bf16.msra.mxu1 %v1914_v51  ;;  %v1999_v51 = vld [vmem:[%s3075_s3 + $0x38] sm:$0xf0]  ;;  %v2174_v32 = vld [vmem:[%s2426_s15 + $0x48] sm:$0xff]  ;;  %v2235_v34 = vld [vmem:[%s3077_s5 + $0x30] sm:$0xff] }
  0x2c   : > { %987 = vmatpush.bf16.msra.mxu2 %v2006_v36  ;;  %v2243_v36 = vld [vmem:[%s3077_s5 + $0x70] sm:$0xff] }
  0x2d   : > { %520 = vmatmul.bf16.vlgmr.msra.gmra.mxu0 %v2165_v54  ;;  %1076 = vmatpush.bf16.msra.mxu3 %v2070_v37 }
  0x2e   : > { %1162 = vmatpush.bf16.msrb.mxu0 %v2034_v52  ;;  %609 = vmatmul.bf16.vlgmr.msra.gmra.mxu1 %v2165_v54  ;;  %v2054_v52 = vor.u32 %v2218_v49, %v2053_v48  ;;  %v2002_v54 = vor.u32 %v2203_v50, %v1999_v51  ;;  %v2175_v49 = vld [vmem:[%s2426_s15 + $0x50] sm:$0xff] }
  0x2f   : > { %1251 = vmatpush.bf16.msrb.mxu1 %v2098_v53  ;;  %v2219_v53 = vld [vmem:[%s3075_s3 + $0xb4] sm:$0xf] }
  0x30   : > { %988 = vmatpush.bf16.msra.mxu2 %v1998_v42  ;;  %v2066_v56 = vor.u32 %v2219_v53, %v2063_v55  ;;  %v1983_v53 = vld [vmem:[%s3075_s3 + $0x18] sm:$0xf0]  ;;  %v2215_v55 = vld [vmem:[%s3075_s3 + $0x94] sm:$0xf] }
  0x31   : > { %1077 = vmatpush.bf16.msra.mxu3 %v2062_v44 }
  0x32   : > { %1163 = vmatpush.bf16.msrb.mxu0 %v2026_v58  ;;  %v2200_v58 = vld [vmem:[%s3075_s3 + $0x14] sm:$0xf0] }
  0x33   : > { %1252 = vmatpush.bf16.msrb.mxu1 %v2090_v60  ;;  %v1982_v60 = vor.u32 %v2200_v58, %v1981_v57 }
  0x34   : > { %989 = vmatpush.bf16.msra.mxu2 %v1990_v47 }
  0x35   : > { %1078 = vmatpush.bf16.msra.mxu3 %v2054_v52  ;;  %v2199_v52 = vld [vmem:[%s3075_s3 + $0x14] sm:$0xf] }
  0x36   : > { %1164 = vmatpush.bf16.msrb.mxu0 %v2018_v2  ;;  %v1974_v2 = vor.u32 %v2198_v0, %v1973_v63 }
  0x37   : > { %1253 = vmatpush.bf16.msrb.mxu1 %v2082_v4  ;;  %v2038_v4 = vor.u32 %v2214_v3, %v2037_v1 }
  0x38   : > { %990 = vmatpush.bf16.msra.mxu2 %v1982_v60 }
  0x3a   : > { %1165 = vmatpush.bf16.msrb.mxu0 %v2010_v10 }
  0x3b   : > { %1254 = vmatpush.bf16.msrb.mxu1 %v2074_v14  ;;  %v2201_v14 = vld [vmem:[%s3075_s3 + $0x24] sm:$0xf] }
  0x3c   : > { %991 = vmatpush.bf16.msra.mxu2 %v1974_v2  ;;  %v1994_v16 = vor.u32 %v2201_v14, %v1991_v15 }
  0x3d   : > { %525 = vmatmul.bf16.gmra.mxu0 %v2166_v61 }
  0x3e   : > { %614 = vmatmul.bf16.gmra.mxu1 %v2166_v61  ;;  %1166 = vmatpush.bf16.msrb.mxu0 %v2002_v54  ;;  %v2216_v61 = vld [vmem:[%s3075_s3 + $0x94] sm:$0xf0]  ;;  %v1986_v54 = vor.u32 %v2199_v52, %v1983_v53  ;;  %v2233_v52 = vld [vmem:[%s3077_s5 + $0x20] sm:$0xff] }
  0x3f   : > { %1255 = vmatpush.bf16.msrb.mxu1 %v2066_v56  ;;  %v2047_v56 = vld [vmem:[%s3075_s3 + $0x98] sm:$0xf0] }
  0x40   : > { %v2050_v57 = vor.u32 %v2215_v55, %v2047_v56 }
  0x42   : > { %1167 = vmatpush.bf16.msrb.mxu0 %v1994_v16 }
  0x46   : > { %1168 = vmatpush.bf16.msrb.mxu0 %v1986_v54  ;;  %v2241_v54 = vld [vmem:[%s3077_s5 + $0x60] sm:$0xff] }
  0x4d   : > { %530 = vmatmul.bf16.gmra.mxu0 %v2167_v62 }
  0x4e   : > { %619 = vmatmul.bf16.gmra.mxu1 %v2167_v62  ;;  %v2046_v62 = vor.u32 %v2216_v61, %v2045_v59 }
  0x50   : > { %1079 = vmatpush.bf16.msra.mxu3 %v2046_v62 }
  0x54   : > { %1080 = vmatpush.bf16.msra.mxu3 %v2038_v4 }
  0x58   : > { %1657 = vmatpush.bf16.msrb.mxu3 %v2244_v7 }
  0x5c   : > { %1658 = vmatpush.bf16.msrb.mxu3 %v2243_v36 }
  0x5d   : > { %535 = vmatmul.bf16.gmra.mxu0 %v2168_v5 }
  0x5e   : > { %624 = vmatmul.bf16.gmra.mxu1 %v2168_v5  ;;  %v2172_v5 = vld [vmem:[%s2426_s15 + $0x38] sm:$0xff] }
  0x6d   : > { %540 = vmatmul.bf16.gmra.mxu0 %v2169_v6 }
  0x6e   : > { %629 = vmatmul.bf16.gmra.mxu1 %v2169_v6  ;;  %v2236_v6 = vld [vmem:[%s3077_s5 + $0x38] sm:$0xff] }
  0x6f   : > { %1568 = vmatpush.bf16.msrb.mxu2 %v2236_v6  ;;  %v2176_v6 = vld [vmem:[%s2426_s15 + $0x58] sm:$0xff] }
  0x73   : > { %1569 = vmatpush.bf16.msrb.mxu2 %v2235_v34  ;;  %v2039_v34 = vld [vmem:[%s3075_s3 + $0x88] sm:$0xf0] }
  0x7d   : > { %545 = vmatmul.bf16.gmra.mxu0 %v2170_v19 }
  0x7e   : > { %634 = vmatmul.bf16.gmra.mxu1 %v2170_v19  ;;  %v2058_v19 = vor.u32 %v2217_v17, %v2055_v18 }
  0x80   : > { %1256 = vmatpush.bf16.msrb.mxu1 %v2058_v19 }
  0x84   : > { %1257 = vmatpush.bf16.msrb.mxu1 %v2050_v57 }
  0x8d   : > { %550 = vmatmul.bf16.gmra.mxu0 %v2171_v41 }
  0x8e   : > { %639 = vmatmul.bf16.gmra.mxu1 %v2171_v41 }
  0x9d   : > { %555 = vmatmul.bf16.gmra.mxu0 %v2172_v5 }
  0x9e   : > { %644 = vmatmul.bf16.gmra.mxu1 %v2172_v5 }
  0xaa   : > { %v521_v10 = vpop.f32.mrf.mxu0 }
  0xab   : > { %v610_v11 = vpop.f32.mrf.mxu1  ;;  %v522_v20 = vadd.f32 %v521_v10, %v2590_v12  ;;  %v2242_v10 = vld [vmem:[%s3077_s5 + $0x68] sm:$0xff] }
  0xac   : > { %v611_v21 = vadd.f32 %v610_v11, %v2592_v13  ;;  %1659 = vmatpush.bf16.msrb.mxu3 %v2242_v10 }
  0xad   : > { %560 = vmatmul.bf16.gmra.mxu0 %v2173_v8  ;;  %v690_v26 = vmax.f32 %v522_v20, 0.0 }
  0xae   : > { %649 = vmatmul.bf16.gmra.mxu1 %v2173_v8  ;;  %v691_v28 = vmax.f32 %v611_v21, 0.0  ;;  %v2234_v8 = vld [vmem:[%s3077_s5 + $0x28] sm:$0xff] }
  0xaf   : > { %1570 = vmatpush.bf16.msrb.mxu2 %v2234_v8 }
  0xb0   : > { %1660 = vmatpush.bf16.msrb.mxu3 %v2241_v54 }
  0xb2   : > { %v523_v22 = vpop.f32.mrf.mxu0 }
  0xb3   : > { %v524_v23 = vadd.f32 %v523_v22, %v2590_v12  ;;  %v612_v24 = vpop.f32.mrf.mxu1  ;;  %1571 = vmatpush.bf16.msrb.mxu2 %v2233_v52 }
  0xb4   : > { %v613_v25 = vadd.f32 %v612_v24, %v2592_v13 }
  0xb5   : > { %v692_v27 = vmax.f32 %v524_v23, 0.0 }
  0xb6   : > { %v693_v29 = vmax.f32 %v613_v25, 0.0  ;;  %v2177_v25 = vld [vmem:[%s2426_s15 + $0x60] sm:$0xff] }
  0xb7   : > { %v2610_v30 = vpack.c.bf16 %v692_v27, %v690_v26 }
  0xb8   : > { %v2612_v31 = vpack.c.bf16 %v693_v29, %v691_v28  ;;  %v2197_v28 = vld [vmem:[%s3075_s3 + $0x4] sm:$0xf]  ;;  %v1975_v29 = vld [vmem:[%s3075_s3 + $0x8] sm:$0xf0] }
  0xb9   : > { %992 = vmatmul.bf16.vlgmr.msra.gmra.mxu2 %v2610_v30 }
  0xba   : > { %1081 = vmatmul.bf16.vlgmr.msra.gmra.mxu3 %v2612_v31  ;;  %v526_v33 = vpop.f32.mrf.mxu0 }
  0xbb   : > { %v615_v35 = vpop.f32.mrf.mxu1  ;;  %v527_v37 = vadd.f32 %v526_v33, %v2590_v12  ;;  %v2213_v33 = vld [vmem:[%s3075_s3 + $0x84] sm:$0xf] }
  0xbc   : > { %v616_v38 = vadd.f32 %v615_v35, %v2592_v13  ;;  %v2042_v35 = vor.u32 %v2213_v33, %v2039_v34 }
  0xbd   : > { %565 = vmatmul.bf16.gmra.mxu0 %v2174_v32  ;;  %v694_v43 = vmax.f32 %v527_v37, 0.0 }
  0xbe   : > { %654 = vmatmul.bf16.gmra.mxu1 %v2174_v32  ;;  %v695_v45 = vmax.f32 %v616_v38, 0.0  ;;  %v1978_v32 = vor.u32 %v2197_v28, %v1975_v29  ;;  %v2240_v28 = vld [vmem:[%s3077_s5 + $0x58] sm:$0xff] }
  0xbf   : > { %1258 = vmatpush.bf16.msrb.mxu1 %v2042_v35  ;;  %1661 = vmatpush.bf16.msrb.mxu3 %v2240_v28 }
  0xc0   : > { %1169 = vmatpush.bf16.msrb.mxu0 %v1978_v32 }
  0xc2   : > { %v528_v39 = vpop.f32.mrf.mxu0 }
  0xc3   : > { %v529_v40 = vadd.f32 %v528_v39, %v2590_v12  ;;  %v617_v41 = vpop.f32.mrf.mxu1 }
  0xc4   : > { %v618_v42 = vadd.f32 %v617_v41, %v2592_v13 }
  0xc5   : > { %v696_v44 = vmax.f32 %v529_v40, 0.0 }
  0xc6   : > { %v697_v46 = vmax.f32 %v618_v42, 0.0 }
  0xc7   : > { %v2627_v47 = vpack.c.bf16 %v696_v44, %v694_v43 }
  0xc8   : > { %v2629_v48 = vpack.c.bf16 %v697_v46, %v695_v45 }
  0xc9   : > { %997 = vmatmul.bf16.gmra.mxu2 %v2627_v47 }
  0xca   : > { %1086 = vmatmul.bf16.gmra.mxu3 %v2629_v48  ;;  %v531_v50 = vpop.f32.mrf.mxu0 }
  0xcb   : > { %v620_v51 = vpop.f32.mrf.mxu1  ;;  %v532_v58 = vadd.f32 %v531_v50, %v2590_v12  ;;  %v2178_v50 = vld [vmem:[%s2426_s15 + $0x68] sm:$0xff] }
  0xcc   : > { %v621_v59 = vadd.f32 %v620_v51, %v2592_v13 }
  0xcd   : > { %570 = vmatmul.bf16.gmra.mxu0 %v2175_v49  ;;  %v698_v0 = vmax.f32 %v532_v58, 0.0 }
  0xce   : > { %659 = vmatmul.bf16.gmra.mxu1 %v2175_v49  ;;  %v699_v2 = vmax.f32 %v621_v59, 0.0 }
  0xd2   : > { %v533_v60 = vpop.f32.mrf.mxu0 }
  0xd3   : > { %v534_v61 = vadd.f32 %v533_v60, %v2590_v12  ;;  %v622_v62 = vpop.f32.mrf.mxu1 }
  0xd4   : > { %v623_v63 = vadd.f32 %v622_v62, %v2592_v13 }
  0xd5   : > { %v700_v1 = vmax.f32 %v534_v61, 0.0 }
  0xd6   : > { %v701_v3 = vmax.f32 %v623_v63, 0.0 }
  0xd7   : > { %v2650_v4 = vpack.c.bf16 %v700_v1, %v698_v0 }
  0xd8   : > { %v2652_v5 = vpack.c.bf16 %v701_v3, %v699_v2  ;;  %v2179_v3 = vld [vmem:[%s2426_s15 + $0x70] sm:$0xff] }
  0xd9   : > { %1002 = vmatmul.bf16.gmra.mxu2 %v2650_v4 }
  0xda   : > { %1091 = vmatmul.bf16.gmra.mxu3 %v2652_v5  ;;  %v536_v7 = vpop.f32.mrf.mxu0 }
  0xdb   : > { %v625_v9 = vpop.f32.mrf.mxu1  ;;  %v537_v11 = vadd.f32 %v536_v7, %v2590_v12 }
  0xdc   : > { %v626_v14 = vadd.f32 %v625_v9, %v2592_v13 }
  0xdd   : > { %575 = vmatmul.bf16.gmra.mxu0 %v2176_v6  ;;  %v702_v19 = vmax.f32 %v537_v11, 0.0 }
  0xde   : > { %664 = vmatmul.bf16.gmra.mxu1 %v2176_v6  ;;  %v703_v21 = vmax.f32 %v626_v14, 0.0 }
  0xe2   : > { %v538_v15 = vpop.f32.mrf.mxu0 }
  0xe3   : > { %v539_v16 = vadd.f32 %v538_v15, %v2590_v12  ;;  %v627_v17 = vpop.f32.mrf.mxu1 }
  0xe4   : > { %v628_v18 = vadd.f32 %v627_v17, %v2592_v13 }
  0xe5   : > { %v704_v20 = vmax.f32 %v539_v16, 0.0 }
  0xe6   : > { %v705_v22 = vmax.f32 %v628_v18, 0.0 }
  0xe7   : > { %v2667_v23 = vpack.c.bf16 %v704_v20, %v702_v19 }
  0xe8   : > { %v2669_v24 = vpack.c.bf16 %v705_v22, %v703_v21  ;;  %v2180_v22 = vld [vmem:[%s2426_s15 + $0x78] sm:$0xff] }
  0xe9   : > { %1007 = vmatmul.bf16.gmra.mxu2 %v2667_v23 }
  0xea   : > { %1096 = vmatmul.bf16.gmra.mxu3 %v2669_v24  ;;  %v541_v26 = vpop.f32.mrf.mxu0 }
  0xeb   : > { %v630_v27 = vpop.f32.mrf.mxu1  ;;  %v542_v36 = vadd.f32 %v541_v26, %v2590_v12  ;;  %v2232_v26 = vld [vmem:[%s3077_s5 + $0x18] sm:$0xff] }
  0xec   : > { %v631_v37 = vadd.f32 %v630_v27, %v2592_v13  ;;  %1572 = vmatpush.bf16.msrb.mxu2 %v2232_v26 }
  0xed   : > { %580 = vmatmul.bf16.gmra.mxu0 %v2177_v25  ;;  %v706_v42 = vmax.f32 %v542_v36, 0.0 }
  0xee   : > { %669 = vmatmul.bf16.gmra.mxu1 %v2177_v25  ;;  %v707_v44 = vmax.f32 %v631_v37, 0.0 }
  0xf2   : > { %v543_v38 = vpop.f32.mrf.mxu0 }
  0xf3   : > { %v544_v39 = vadd.f32 %v543_v38, %v2590_v12  ;;  %v632_v40 = vpop.f32.mrf.mxu1 }
  0xf4   : > { %v633_v41 = vadd.f32 %v632_v40, %v2592_v13 }
  0xf5   : > { %v708_v43 = vmax.f32 %v544_v39, 0.0 }
  0xf6   : > { %v709_v45 = vmax.f32 %v633_v41, 0.0 }
  0xf7   : > { %v2690_v46 = vpack.c.bf16 %v708_v43, %v706_v42 }
  0xf8   : > { %v2692_v49 = vpack.c.bf16 %v709_v45, %v707_v44 }
  0xf9   : > { %1012 = vmatmul.bf16.gmra.mxu2 %v2690_v46 }
  0xfa   : > { %1101 = vmatmul.bf16.gmra.mxu3 %v2692_v49  ;;  %v546_v51 = vpop.f32.mrf.mxu0 }
  0xfb   : > { %v635_v53 = vpop.f32.mrf.mxu1  ;;  %v547_v55 = vadd.f32 %v546_v51, %v2590_v12 }
  0xfc   : > { %v636_v56 = vadd.f32 %v635_v53, %v2592_v13 }
  0xfd   : > { %585 = vmatmul.bf16.gmra.mxu0 %v2178_v50  ;;  %v710_v61 = vmax.f32 %v547_v55, 0.0 }
  0xfe   : > { %674 = vmatmul.bf16.gmra.mxu1 %v2178_v50  ;;  %v711_v63 = vmax.f32 %v636_v56, 0.0 }
 0x102   : > { %v548_v57 = vpop.f32.mrf.mxu0 }
 0x103   : > { %v549_v58 = vadd.f32 %v548_v57, %v2590_v12  ;;  %v637_v59 = vpop.f32.mrf.mxu1 }
 0x104   : > { %v638_v60 = vadd.f32 %v637_v59, %v2592_v13 }
 0x105   : > { %v712_v62 = vmax.f32 %v549_v58, 0.0 }
 0x106   : > { %v713_v0 = vmax.f32 %v638_v60, 0.0 }
 0x107   : > { %v2707_v1 = vpack.c.bf16 %v712_v62, %v710_v61  ;;  %v2231_v62 = vld [vmem:[%s3077_s5 + $0x10] sm:$0xff] }
 0x108   : > { %v2709_v2 = vpack.c.bf16 %v713_v0, %v711_v63  ;;  %1573 = vmatpush.bf16.msrb.mxu2 %v2231_v62 }
 0x109   : > { %1017 = vmatmul.bf16.gmra.mxu2 %v2707_v1 }
 0x10a   : > { %1106 = vmatmul.bf16.gmra.mxu3 %v2709_v2  ;;  %v551_v6 = vpop.f32.mrf.mxu0 }
 0x10b   : > { %v640_v7 = vpop.f32.mrf.mxu1  ;;  %v552_v8 = vadd.f32 %v551_v6, %v2590_v12 }
 0x10c   : > { %v641_v9 = vadd.f32 %v640_v7, %v2592_v13  ;;  %v2239_v7 = vld [vmem:[%s3077_s5 + $0x50] sm:$0xff] }
 0x10d   : > { %590 = vmatmul.bf16.gmra.mxu0 %v2179_v3  ;;  %v714_v16 = vmax.f32 %v552_v8, 0.0  ;;  %1662 = vmatpush.bf16.msrb.mxu3 %v2239_v7 }
 0x10e   : > { %679 = vmatmul.bf16.gmra.mxu1 %v2179_v3  ;;  %v715_v18 = vmax.f32 %v641_v9, 0.0 }
 0x112   : > { %v553_v10 = vpop.f32.mrf.mxu0 }
 0x113   : > { %v554_v11 = vadd.f32 %v553_v10, %v2590_v12  ;;  %v642_v14 = vpop.f32.mrf.mxu1 }
 0x114   : > { %v643_v15 = vadd.f32 %v642_v14, %v2592_v13 }
 0x115   : > { %v716_v17 = vmax.f32 %v554_v11, 0.0 }
 0x116   : > { %v717_v19 = vmax.f32 %v643_v15, 0.0 }
 0x117   : > { %v2718_v20 = vpack.c.bf16 %v716_v17, %v714_v16 }
 0x118   : > { %v2720_v21 = vpack.c.bf16 %v717_v19, %v715_v18 }
 0x119   : > { %1022 = vmatmul.bf16.gmra.mxu2 %v2718_v20 }
 0x11a   : > { %1111 = vmatmul.bf16.gmra.mxu3 %v2720_v21  ;;  %v556_v25 = vpop.f32.mrf.mxu0 }
 0x11b   : > { %v645_v27 = vpop.f32.mrf.mxu1  ;;  %v557_v29 = vadd.f32 %v556_v25, %v2590_v12 }
 0x11c   : > { %v646_v32 = vadd.f32 %v645_v27, %v2592_v13 }
 0x11d   : > { %595 = vmatmul.bf16.gmra.mxu0 %v2180_v22  ;;  %v718_v37 = vmax.f32 %v557_v29, 0.0 }
 0x11e   : > { %684 = vmatmul.bf16.gmra.mxu1 %v2180_v22  ;;  %v719_v39 = vmax.f32 %v646_v32, 0.0 }
 0x122   : > { %v558_v33 = vpop.f32.mrf.mxu0 }
 0x123   : > { %v559_v34 = vadd.f32 %v558_v33, %v2590_v12  ;;  %v647_v35 = vpop.f32.mrf.mxu1 }
 0x124   : > { %v648_v36 = vadd.f32 %v647_v35, %v2592_v13 }
 0x125   : > { %v720_v38 = vmax.f32 %v559_v34, 0.0 }
 0x126   : > { %v721_v40 = vmax.f32 %v648_v36, 0.0 }
 0x127   : > { %v2735_v41 = vpack.c.bf16 %v720_v38, %v718_v37 }
 0x128   : > { %v2737_v42 = vpack.c.bf16 %v721_v40, %v719_v39 }
 0x129   : > { %1027 = vmatmul.bf16.gmra.mxu2 %v2735_v41 }
 0x12a   : > { %1116 = vmatmul.bf16.gmra.mxu3 %v2737_v42  ;;  %v561_v43 = vpop.f32.mrf.mxu0 }
 0x12b   : > { %v650_v44 = vpop.f32.mrf.mxu1  ;;  %v562_v45 = vadd.f32 %v561_v43, %v2590_v12 }
 0x12c   : > { %v651_v50 = vadd.f32 %v650_v44, %v2592_v13 }
 0x12d   : > { %1170 = vmatmul.bf16.vlgmr.msrb.gmra.mxu0 %v2610_v30  ;;  %v722_v55 = vmax.f32 %v562_v45, 0.0  ;;  %v2750_v30 = vld [vmem:[%s3076_s4] sm:$0x3] }
 0x12e   : > { %1259 = vmatmul.bf16.vlgmr.msrb.gmra.mxu1 %v2612_v31  ;;  %v723_v57 = vmax.f32 %v651_v50, 0.0  ;;  %v2758_v60 = vperm.slane %v2750_v30, 0 }
 0x132   : > { %v563_v51 = vpop.f32.mrf.mxu0 }
 0x133   : > { %v564_v52 = vadd.f32 %v563_v51, %v2590_v12  ;;  %v652_v53 = vpop.f32.mrf.mxu1 }
 0x134   : > { %v653_v54 = vadd.f32 %v652_v53, %v2592_v13 }
 0x135   : > { %v724_v56 = vmax.f32 %v564_v52, 0.0 }
 0x136   : > { %v725_v58 = vmax.f32 %v653_v54, 0.0 }
 0x137   : > { %v2752_v31 = vpack.c.bf16 %v724_v56, %v722_v55 }
 0x138   : > { %v2754_v59 = vpack.c.bf16 %v725_v58, %v723_v57 }
 0x139   : > { %1032 = vmatmul.bf16.gmra.mxu2 %v2752_v31 }
 0x13a   : > { %1121 = vmatmul.bf16.gmra.mxu3 %v2754_v59  ;;  %v566_v61 = vpop.f32.mrf.mxu0 }
 0x13b   : > { %v655_v63 = vpop.f32.mrf.mxu1  ;;  %v567_v9 = vadd.f32 %v566_v61, %v2590_v12 }
 0x13c   : > { %v993_v0 = vpop.f32.mrf.mxu2  ;;  %v656_v10 = vadd.f32 %v655_v63, %v2592_v13 }
 0x13d   : > { %v994_v3 = vadd.f32 %v993_v0, %v2758_v60  ;;  %v1082_v6 = vpop.f32.mrf.mxu3  ;;  %1175 = vmatmul.bf16.gmra.mxu0 %v2627_v47  ;;  %v726_v47 = vmax.f32 %v567_v9, 0.0 }
 0x13e   : > { %1264 = vmatmul.bf16.gmra.mxu1 %v2629_v48  ;;  %v727_v22 = vmax.f32 %v656_v10, 0.0 }
 0x13f   : > { %v1083_v8 = vadd.f32 %v1082_v6, %v994_v3  ;;  %v2230_v3 = vld [vmem:[%s3077_s5 + $0x8] sm:$0xff] }
 0x140   : > { %1574 = vmatpush.bf16.msrb.mxu2 %v2230_v3 }
 0x141   : > { %v1340_v29 = vmax.f32 %v1083_v8, 0.0 }
 0x142   : > { %v568_v11 = vpop.f32.mrf.mxu0 }
 0x143   : > { %v569_v14 = vadd.f32 %v568_v11, %v2590_v12  ;;  %v657_v15 = vpop.f32.mrf.mxu1  ;;  %v2238_v11 = vld [vmem:[%s3077_s5 + $0x48] sm:$0xff] }
 0x144   : > { %v658_v16 = vadd.f32 %v657_v15, %v2592_v13  ;;  %v995_v17 = vpop.f32.mrf.mxu2  ;;  %1663 = vmatpush.bf16.msrb.mxu3 %v2238_v11  ;;  %v2229_v11 = vld [vmem:[%s3077_s5] sm:$0xff] }
 0x145   : > { %v728_v18 = vmax.f32 %v569_v14, 0.0  ;;  %v996_v48 = vadd.f32 %v995_v17, %v2758_v60  ;;  %v1084_v19 = vpop.f32.mrf.mxu3  ;;  %1575 = vmatpush.bf16.msrb.mxu2 %v2229_v11 }
 0x146   : > { %v729_v25 = vmax.f32 %v658_v16, 0.0 }
 0x147   : > { %v1085_v26 = vadd.f32 %v1084_v19, %v996_v48  ;;  %v2775_v27 = vpack.c.bf16 %v728_v18, %v726_v47 }
 0x148   : > { %v2777_v28 = vpack.c.bf16 %v729_v25, %v727_v22 }
 0x149   : > { %v1342_v32 = vmax.f32 %v1085_v26, 0.0  ;;  %1037 = vmatmul.bf16.gmra.mxu2 %v2775_v27 }
 0x14a   : > { %1126 = vmatmul.bf16.gmra.mxu3 %v2777_v28  ;;  %v571_v33 = vpop.f32.mrf.mxu0 }
 0x14b   : > { %v2781_v34 = vpack.c.bf16 %v1342_v32, %v1340_v29  ;;  %v660_v35 = vpop.f32.mrf.mxu1  ;;  %v572_v40 = vadd.f32 %v571_v33, %v2590_v12 }
 0x14c   : > { %v998_v36 = vpop.f32.mrf.mxu2  ;;  %v661_v43 = vadd.f32 %v660_v35, %v2592_v13 }
 0x14d   : > { %v999_v37 = vadd.f32 %v998_v36, %v2758_v60  ;;  %v1087_v38 = vpop.f32.mrf.mxu3  ;;  %1180 = vmatmul.bf16.gmra.mxu0 %v2650_v4  ;;  %v730_v53 = vmax.f32 %v572_v40, 0.0 }
 0x14e   : > { %1269 = vmatmul.bf16.gmra.mxu1 %v2652_v5  ;;  %v731_v4 = vmax.f32 %v661_v43, 0.0 }
 0x14f   : > { %v1088_v39 = vadd.f32 %v1087_v38, %v999_v37 }
 0x151   : > { %v1344_v62 = vmax.f32 %v1088_v39, 0.0 }
 0x152   : > { %v573_v44 = vpop.f32.mrf.mxu0 }
 0x153   : > { %v574_v45 = vadd.f32 %v573_v44, %v2590_v12  ;;  %v662_v50 = vpop.f32.mrf.mxu1 }
 0x154   : > { %v663_v51 = vadd.f32 %v662_v50, %v2592_v13  ;;  %v1000_v52 = vpop.f32.mrf.mxu2 }
 0x155   : > { %v732_v54 = vmax.f32 %v574_v45, 0.0  ;;  %v1001_v55 = vadd.f32 %v1000_v52, %v2758_v60  ;;  %v1089_v56 = vpop.f32.mrf.mxu3 }
 0x156   : > { %v733_v57 = vmax.f32 %v663_v51, 0.0 }
 0x157   : > { %v1090_v5 = vadd.f32 %v1089_v56, %v1001_v55  ;;  %v2791_v58 = vpack.c.bf16 %v732_v54, %v730_v53 }
 0x158   : > { %v2793_v61 = vpack.c.bf16 %v733_v57, %v731_v4 }
 0x159   : > { %v1346_v63 = vmax.f32 %v1090_v5, 0.0  ;;  %1042 = vmatmul.bf16.gmra.mxu2 %v2791_v58 }
 0x15a   : > { %1131 = vmatmul.bf16.gmra.mxu3 %v2793_v61  ;;  %v576_v0 = vpop.f32.mrf.mxu0 }
 0x15b   : > { %v665_v6 = vpop.f32.mrf.mxu1  ;;  %v2800_v7 = vpack.c.bf16 %v1346_v63, %v1344_v62  ;;  %v577_v15 = vadd.f32 %v576_v0, %v2590_v12 }
 0x15c   : > { %v1003_v8 = vpop.f32.mrf.mxu2  ;;  %v666_v16 = vadd.f32 %v665_v6, %v2592_v13 }
 0x15d   : > { %v1004_v9 = vadd.f32 %v1003_v8, %v2758_v60  ;;  %v1092_v10 = vpop.f32.mrf.mxu3  ;;  %1185 = vmatmul.bf16.gmra.mxu0 %v2667_v23  ;;  %v734_v23 = vmax.f32 %v577_v15, 0.0 }
 0x15e   : > { %1274 = vmatmul.bf16.gmra.mxu1 %v2669_v24  ;;  %v735_v26 = vmax.f32 %v666_v16, 0.0 }
 0x15f   : > { %v1093_v14 = vadd.f32 %v1092_v10, %v1004_v9 }
 0x161   : > { %v1348_v36 = vmax.f32 %v1093_v14, 0.0 }
 0x162   : > { %v578_v17 = vpop.f32.mrf.mxu0 }
 0x163   : > { %v579_v47 = vadd.f32 %v578_v17, %v2590_v12  ;;  %v667_v18 = vpop.f32.mrf.mxu1 }
 0x164   : > { %v668_v48 = vadd.f32 %v667_v18, %v2592_v13  ;;  %v1005_v19 = vpop.f32.mrf.mxu2  ;;  %v2237_v18 = vld [vmem:[%s3077_s5 + $0x40] sm:$0xff] }
 0x165   : > { %v736_v22 = vmax.f32 %v579_v47, 0.0  ;;  %v1006_v24 = vadd.f32 %v1005_v19, %v2758_v60  ;;  %v1094_v25 = vpop.f32.mrf.mxu3  ;;  %1664 = vmatpush.bf16.msrb.mxu3 %v2237_v18 }
 0x166   : > { %v737_v29 = vmax.f32 %v668_v48, 0.0 }
 0x167   : > { %v1095_v32 = vadd.f32 %v1094_v25, %v1006_v24  ;;  %v2813_v33 = vpack.c.bf16 %v736_v22, %v734_v23 }
 0x168   : > { %v2815_v35 = vpack.c.bf16 %v737_v29, %v735_v26 }
 0x169   : > { %v1350_v37 = vmax.f32 %v1095_v32, 0.0  ;;  %1047 = vmatmul.bf16.gmra.mxu2 %v2813_v33 }
 0x16a   : > { %1136 = vmatmul.bf16.gmra.mxu3 %v2815_v35  ;;  %v581_v38 = vpop.f32.mrf.mxu0 }
 0x16b   : > { %v670_v39 = vpop.f32.mrf.mxu1  ;;  %v2819_v40 = vpack.c.bf16 %v1350_v37, %v1348_v36  ;;  %v582_v51 = vadd.f32 %v581_v38, %v2590_v12 }
 0x16c   : > { %v1008_v43 = vpop.f32.mrf.mxu2  ;;  %v671_v52 = vadd.f32 %v670_v39, %v2592_v13 }
 0x16d   : > { %v1009_v44 = vadd.f32 %v1008_v43, %v2758_v60  ;;  %v1097_v45 = vpop.f32.mrf.mxu3  ;;  %1190 = vmatmul.bf16.gmra.mxu0 %v2690_v46  ;;  %v738_v57 = vmax.f32 %v582_v51, 0.0 }
 0x16e   : > { %1279 = vmatmul.bf16.gmra.mxu1 %v2692_v49  ;;  %v739_v46 = vmax.f32 %v671_v52, 0.0 }
 0x16f   : > { %v1098_v50 = vadd.f32 %v1097_v45, %v1009_v44 }
 0x171   : > { %v1352_v8 = vmax.f32 %v1098_v50, 0.0 }
 0x172   : > { %v583_v53 = vpop.f32.mrf.mxu0 }
 0x173   : > { %v584_v54 = vadd.f32 %v583_v53, %v2590_v12  ;;  %v672_v55 = vpop.f32.mrf.mxu1 }
 0x174   : > { %v673_v56 = vadd.f32 %v672_v55, %v2592_v13  ;;  %v1010_v4 = vpop.f32.mrf.mxu2 }
 0x175   : > { %v740_v5 = vmax.f32 %v584_v54, 0.0  ;;  %v1011_v62 = vadd.f32 %v1010_v4, %v2758_v60  ;;  %v1099_v63 = vpop.f32.mrf.mxu3 }
 0x176   : > { %v741_v0 = vmax.f32 %v673_v56, 0.0 }
 0x177   : > { %v1100_v49 = vadd.f32 %v1099_v63, %v1011_v62  ;;  %v2829_v3 = vpack.c.bf16 %v740_v5, %v738_v57 }
 0x178   : > { %v2831_v6 = vpack.c.bf16 %v741_v0, %v739_v46 }
 0x179   : > { %v1354_v9 = vmax.f32 %v1100_v49, 0.0  ;;  %1052 = vmatmul.bf16.gmra.mxu2 %v2829_v3 }
 0x17a   : > { %1141 = vmatmul.bf16.gmra.mxu3 %v2831_v6  ;;  %v586_v10 = vpop.f32.mrf.mxu0 }
 0x17b   : > { %v675_v14 = vpop.f32.mrf.mxu1  ;;  %v2838_v15 = vpack.c.bf16 %v1354_v9, %v1352_v8  ;;  %v587_v19 = vadd.f32 %v586_v10, %v2590_v12 }
 0x17c   : > { %v1013_v16 = vpop.f32.mrf.mxu2  ;;  %v676_v23 = vadd.f32 %v675_v14, %v2592_v13 }
 0x17d   : > { %v1014_v17 = vadd.f32 %v1013_v16, %v2758_v60  ;;  %v1102_v47 = vpop.f32.mrf.mxu3  ;;  %1195 = vmatmul.bf16.gmra.mxu0 %v2707_v1  ;;  %v742_v1 = vmax.f32 %v587_v19, 0.0 }
 0x17e   : > { %1284 = vmatmul.bf16.gmra.mxu1 %v2709_v2  ;;  %v743_v37 = vmax.f32 %v676_v23, 0.0 }
 0x17f   : > { %v1103_v48 = vadd.f32 %v1102_v47, %v1014_v17 }
 0x181   : > { %v1356_v45 = vmax.f32 %v1103_v48, 0.0 }
 0x182   : > { %v588_v22 = vpop.f32.mrf.mxu0 }
 0x183   : > { %v589_v24 = vadd.f32 %v588_v22, %v2590_v12  ;;  %v677_v25 = vpop.f32.mrf.mxu1 }
 0x184   : > { %v678_v26 = vadd.f32 %v677_v25, %v2592_v13  ;;  %v1015_v29 = vpop.f32.mrf.mxu2 }
 0x185   : > { %v744_v32 = vmax.f32 %v589_v24, 0.0  ;;  %v1016_v2 = vadd.f32 %v1015_v29, %v2758_v60  ;;  %v1104_v36 = vpop.f32.mrf.mxu3 }
 0x186   : > { %v745_v38 = vmax.f32 %v678_v26, 0.0 }
 0x187   : > { %v1105_v39 = vadd.f32 %v1104_v36, %v1016_v2  ;;  %v2851_v43 = vpack.c.bf16 %v744_v32, %v742_v1 }
 0x188   : > { %v2853_v44 = vpack.c.bf16 %v745_v38, %v743_v37 }
 0x189   : > { %v1358_v50 = vmax.f32 %v1105_v39, 0.0  ;;  %1057 = vmatmul.bf16.gmra.mxu2 %v2851_v43 }
 0x18a   : > { %1146 = vmatmul.bf16.gmra.mxu3 %v2853_v44  ;;  %v591_v51 = vpop.f32.mrf.mxu0 }
 0x18b   : > { %v680_v52 = vpop.f32.mrf.mxu1  ;;  %v2857_v53 = vpack.c.bf16 %v1358_v50, %v1356_v45  ;;  %v592_v57 = vadd.f32 %v591_v51, %v2590_v12 }
 0x18c   : > { %v1018_v54 = vpop.f32.mrf.mxu2  ;;  %v681_v5 = vadd.f32 %v680_v52, %v2592_v13 }
 0x18d   : > { %v1019_v55 = vadd.f32 %v1018_v54, %v2758_v60  ;;  %v1107_v56 = vpop.f32.mrf.mxu3  ;;  %1200 = vmatmul.bf16.gmra.mxu0 %v2718_v20  ;;  %v746_v8 = vmax.f32 %v592_v57, 0.0 }
 0x18e   : > { %1289 = vmatmul.bf16.gmra.mxu1 %v2720_v21  ;;  %v747_v20 = vmax.f32 %v681_v5, 0.0 }
 0x18f   : > { %v1108_v4 = vadd.f32 %v1107_v56, %v1019_v55 }
 0x191   : > { %v1360_v47 = vmax.f32 %v1108_v4, 0.0 }
 0x192   : > { %v593_v62 = vpop.f32.mrf.mxu0 }
 0x193   : > { %v594_v63 = vadd.f32 %v593_v62, %v2590_v12  ;;  %v682_v46 = vpop.f32.mrf.mxu1 }
 0x194   : > { %v683_v0 = vadd.f32 %v682_v46, %v2592_v13  ;;  %v1020_v49 = vpop.f32.mrf.mxu2 }
 0x195   : > { %v748_v9 = vmax.f32 %v594_v63, 0.0  ;;  %v1021_v10 = vadd.f32 %v1020_v49, %v2758_v60  ;;  %v1109_v11 = vpop.f32.mrf.mxu3 }
 0x196   : > { %v749_v14 = vmax.f32 %v683_v0, 0.0 }
 0x197   : > { %v1110_v21 = vadd.f32 %v1109_v11, %v1021_v10  ;;  %v2867_v16 = vpack.c.bf16 %v748_v9, %v746_v8 }
 0x198   : > { %v2869_v17 = vpack.c.bf16 %v749_v14, %v747_v20 }
 0x199   : > { %v1362_v18 = vmax.f32 %v1110_v21, 0.0  ;;  %1062 = vmatmul.bf16.gmra.mxu2 %v2867_v16 }
 0x19a   : > { %1151 = vmatmul.bf16.gmra.mxu3 %v2869_v17  ;;  %v596_v48 = vpop.f32.mrf.mxu0 }
 0x19b   : > { %v685_v19 = vpop.f32.mrf.mxu1  ;;  %v2873_v23 = vpack.c.bf16 %v1362_v18, %v1360_v47  ;;  %v597_v29 = vadd.f32 %v596_v48, %v2590_v12 }
 0x19c   : > { %v1023_v22 = vpop.f32.mrf.mxu2  ;;  %v686_v1 = vadd.f32 %v685_v19, %v2592_v13 }
 0x19d   : > { %v1024_v24 = vadd.f32 %v1023_v22, %v2758_v60  ;;  %v1112_v25 = vpop.f32.mrf.mxu3  ;;  %1205 = vmatmul.bf16.gmra.mxu0 %v2735_v41  ;;  %v750_v39 = vmax.f32 %v597_v29, 0.0 }
 0x19e   : > { %1294 = vmatmul.bf16.gmra.mxu1 %v2737_v42  ;;  %v751_v41 = vmax.f32 %v686_v1, 0.0 }
 0x19f   : > { %v1113_v26 = vadd.f32 %v1112_v25, %v1024_v24 }
 0x1a1   : > { %v1364_v56 = vmax.f32 %v1113_v26, 0.0 }
 0x1a2   : > { %v598_v32 = vpop.f32.mrf.mxu0 }
 0x1a3   : > { %v599_v2 = vadd.f32 %v598_v32, %v2590_v12  ;;  %v687_v36 = vpop.f32.mrf.mxu1 }
 0x1a4   : > { %v688_v37 = vadd.f32 %v687_v36, %v2592_v13  ;;  %v1025_v38 = vpop.f32.mrf.mxu2  ;;  %v2890_v13 = vperm.slane %v2750_v30, 1 }
 0x1a5   : > { %v752_v45 = vmax.f32 %v599_v2, 0.0  ;;  %v1026_v50 = vadd.f32 %v1025_v38, %v2758_v60  ;;  %v1114_v51 = vpop.f32.mrf.mxu3 }
 0x1a6   : > { %v753_v52 = vmax.f32 %v688_v37, 0.0 }
 0x1a7   : > { %v1115_v42 = vadd.f32 %v1114_v51, %v1026_v50  ;;  %v2883_v54 = vpack.c.bf16 %v752_v45, %v750_v39 }
 0x1a8   : > { %v2885_v55 = vpack.c.bf16 %v753_v52, %v751_v41 }
 0x1a9   : > { %v1366_v4 = vmax.f32 %v1115_v42, 0.0  ;;  %1067 = vmatmul.bf16.gmra.mxu2 %v2883_v54 }
 0x1aa   : > { %1156 = vmatmul.bf16.gmra.mxu3 %v2885_v55  ;;  %v1171_v12 = vpop.f32.mrf.mxu0 }
 0x1ab   : > { %v1260_v57 = vpop.f32.mrf.mxu1  ;;  %v2892_v5 = vpack.c.bf16 %v1366_v4, %v1364_v56  ;;  %v1172_v0 = vadd.f32 %v1171_v12, %v2890_v13 }
 0x1ac   : > { %v1028_v62 = vpop.f32.mrf.mxu2 }
 0x1ad   : > { %v1029_v63 = vadd.f32 %v1028_v62, %v2758_v60  ;;  %v1117_v46 = vpop.f32.mrf.mxu3  ;;  %1210 = vmatmul.bf16.gmra.mxu0 %v2752_v31  ;;  %v1261_v9 = vadd.f32 %v1260_v57, %v1172_v0 }
 0x1ae   : > { %1299 = vmatmul.bf16.gmra.mxu1 %v2754_v59 }
 0x1af   : > { %v1118_v49 = vadd.f32 %v1117_v46, %v1029_v63  ;;  %v1341_v47 = vmax.f32 %v1261_v9, 0.0 }
 0x1b1   : > { %v1368_v19 = vmax.f32 %v1118_v49, 0.0 }
 0x1b2   : > { %v1173_v8 = vpop.f32.mrf.mxu0 }
 0x1b3   : > { %v1174_v10 = vadd.f32 %v1173_v8, %v2890_v13  ;;  %v1262_v30 = vpop.f32.mrf.mxu1 }
 0x1b4   : > { %v1030_v11 = vpop.f32.mrf.mxu2 }
 0x1b5   : > { %v1263_v20 = vadd.f32 %v1262_v30, %v1174_v10  ;;  %v1031_v14 = vadd.f32 %v1030_v11, %v2758_v60  ;;  %v1119_v21 = vpop.f32.mrf.mxu3 }
 0x1b7   : > { %v1343_v18 = vmax.f32 %v1263_v20, 0.0  ;;  %v1120_v48 = vadd.f32 %v1119_v21, %v1031_v14 }
 0x1b9   : > { %v1405_v31 = vpack.c.bf16 %v1343_v18, %v1341_v47  ;;  %v1370_v22 = vmax.f32 %v1120_v48, 0.0  ;;  %1576 = vmatmul.bf16.vlgmr.msrb.gmra.mxu2 %v2781_v34 }
 0x1ba   : > { %v1176_v59 = vpop.f32.mrf.mxu0 }
 0x1bb   : > { %v1265_v24 = vpop.f32.mrf.mxu1  ;;  %1665 = vmatmul.bf16.vlgmr.msrb.gmra.mxu3 %v1405_v31  ;;  %v2901_v25 = vpack.c.bf16 %v1370_v22, %v1368_v19  ;;  %v1177_v32 = vadd.f32 %v1176_v59, %v2890_v13 }
 0x1bc   : > { %v1033_v26 = vpop.f32.mrf.mxu2 }
 0x1bd   : > { %v1034_v29 = vadd.f32 %v1033_v26, %v2758_v60  ;;  %v1122_v1 = vpop.f32.mrf.mxu3  ;;  %1215 = vmatmul.bf16.gmra.mxu0 %v2775_v27  ;;  %v1266_v37 = vadd.f32 %v1265_v24, %v1177_v32 }
 0x1be   : > { %1304 = vmatmul.bf16.gmra.mxu1 %v2777_v28 }
 0x1bf   : > { %v1123_v2 = vadd.f32 %v1122_v1, %v1034_v29  ;;  %v1345_v41 = vmax.f32 %v1266_v37, 0.0 }
 0x1c1   : > { %v1372_v56 = vmax.f32 %v1123_v2, 0.0 }
 0x1c2   : > { %v1178_v36 = vpop.f32.mrf.mxu0 }
 0x1c3   : > { %v1179_v34 = vadd.f32 %v1178_v36, %v2890_v13  ;;  %v1267_v38 = vpop.f32.mrf.mxu1 }
 0x1c4   : > { %v1035_v39 = vpop.f32.mrf.mxu2 }
 0x1c5   : > { %v1268_v45 = vadd.f32 %v1267_v38, %v1179_v34  ;;  %v1036_v50 = vadd.f32 %v1035_v39, %v2758_v60  ;;  %v1124_v51 = vpop.f32.mrf.mxu3 }
 0x1c7   : > { %v1347_v52 = vmax.f32 %v1268_v45, 0.0  ;;  %v1125_v42 = vadd.f32 %v1124_v51, %v1036_v50 }
 0x1c9   : > { %v1374_v27 = vmax.f32 %v1125_v42, 0.0  ;;  %1581 = vmatmul.bf16.gmra.mxu2 %v2800_v7  ;;  %v1407_v28 = vpack.c.bf16 %v1347_v52, %v1345_v41 }
 0x1ca   : > { %v1181_v4 = vpop.f32.mrf.mxu0 }
 0x1cb   : > { %v1270_v12 = vpop.f32.mrf.mxu1  ;;  %1670 = vmatmul.bf16.gmra.mxu3 %v1407_v28  ;;  %v2910_v57 = vpack.c.bf16 %v1374_v27, %v1372_v56  ;;  %v1182_v0 = vadd.f32 %v1181_v4, %v2890_v13 }
 0x1cc   : > { %v1038_v62 = vpop.f32.mrf.mxu2 }
 0x1cd   : > { %v1039_v63 = vadd.f32 %v1038_v62, %v2758_v60  ;;  %v1127_v46 = vpop.f32.mrf.mxu3  ;;  %1220 = vmatmul.bf16.gmra.mxu0 %v2791_v58  ;;  %v1271_v9 = vadd.f32 %v1270_v12, %v1182_v0 }
 0x1ce   : > { %1309 = vmatmul.bf16.gmra.mxu1 %v2793_v61 }
 0x1cf   : > { %v1128_v49 = vadd.f32 %v1127_v46, %v1039_v63  ;;  %v1349_v21 = vmax.f32 %v1271_v9, 0.0 }
 0x1d1   : > { %v1376_v48 = vmax.f32 %v1128_v49, 0.0 }
 0x1d2   : > { %v1183_v8 = vpop.f32.mrf.mxu0 }
 0x1d3   : > { %v1184_v7 = vadd.f32 %v1183_v8, %v2890_v13  ;;  %v1272_v10 = vpop.f32.mrf.mxu1 }
 0x1d4   : > { %v1040_v30 = vpop.f32.mrf.mxu2 }
 0x1d5   : > { %v1273_v11 = vadd.f32 %v1272_v10, %v1184_v7  ;;  %v1041_v20 = vadd.f32 %v1040_v30, %v2758_v60  ;;  %v1129_v14 = vpop.f32.mrf.mxu3 }
 0x1d7   : > { %v1351_v47 = vmax.f32 %v1273_v11, 0.0  ;;  %v1130_v18 = vadd.f32 %v1129_v14, %v1041_v20 }
 0x1d9   : > { %v1378_v58 = vmax.f32 %v1130_v18, 0.0  ;;  %1586 = vmatmul.bf16.gmra.mxu2 %v2819_v40  ;;  %v1409_v61 = vpack.c.bf16 %v1351_v47, %v1349_v21 }
 0x1da   : > { %v1186_v19 = vpop.f32.mrf.mxu0 }
 0x1db   : > { %v1275_v31 = vpop.f32.mrf.mxu1  ;;  %1675 = vmatmul.bf16.gmra.mxu3 %v1409_v61  ;;  %v2919_v22 = vpack.c.bf16 %v1378_v58, %v1376_v48  ;;  %v1187_v29 = vadd.f32 %v1186_v19, %v2890_v13 }
 0x1dc   : > { %v1043_v59 = vpop.f32.mrf.mxu2 }
 0x1dd   : > { %v1044_v24 = vadd.f32 %v1043_v59, %v2758_v60  ;;  %v1132_v26 = vpop.f32.mrf.mxu3  ;;  %1225 = vmatmul.bf16.gmra.mxu0 %v2813_v33  ;;  %v1276_v2 = vadd.f32 %v1275_v31, %v1187_v29 }
 0x1de   : > { %1314 = vmatmul.bf16.gmra.mxu1 %v2815_v35 }
 0x1df   : > { %v1133_v1 = vadd.f32 %v1132_v26, %v1044_v24  ;;  %v1353_v45 = vmax.f32 %v1276_v2, 0.0 }
 0x1e1   : > { %v1380_v41 = vmax.f32 %v1133_v1, 0.0 }
 0x1e2   : > { %v1188_v32 = vpop.f32.mrf.mxu0 }
 0x1e3   : > { %v1189_v40 = vadd.f32 %v1188_v32, %v2890_v13  ;;  %v1277_v36 = vpop.f32.mrf.mxu1 }
 0x1e4   : > { %v1045_v37 = vpop.f32.mrf.mxu2 }
 0x1e5   : > { %v1278_v34 = vadd.f32 %v1277_v36, %v1189_v40  ;;  %v1046_v38 = vadd.f32 %v1045_v37, %v2758_v60  ;;  %v1134_v39 = vpop.f32.mrf.mxu3 }
 0x1e7   : > { %v1355_v50 = vmax.f32 %v1278_v34, 0.0  ;;  %v1135_v51 = vadd.f32 %v1134_v39, %v1046_v38 }
 0x1e9   : > { %v1382_v33 = vmax.f32 %v1135_v51, 0.0  ;;  %1591 = vmatmul.bf16.gmra.mxu2 %v2838_v15  ;;  %v1411_v35 = vpack.c.bf16 %v1355_v50, %v1353_v45 }
 0x1ea   : > { %v1191_v52 = vpop.f32.mrf.mxu0 }
 0x1eb   : > { %v1280_v42 = vpop.f32.mrf.mxu1  ;;  %1680 = vmatmul.bf16.gmra.mxu3 %v1411_v35  ;;  %v2928_v56 = vpack.c.bf16 %v1382_v33, %v1380_v41  ;;  %v1192_v12 = vadd.f32 %v1191_v52, %v2890_v13 }
 0x1ec   : > { %v1048_v27 = vpop.f32.mrf.mxu2 }
 0x1ed   : > { %v1049_v28 = vadd.f32 %v1048_v27, %v2758_v60  ;;  %v1137_v4 = vpop.f32.mrf.mxu3  ;;  %1230 = vmatmul.bf16.gmra.mxu0 %v2829_v3  ;;  %v1281_v46 = vadd.f32 %v1280_v42, %v1192_v12 }
 0x1ee   : > { %1319 = vmatmul.bf16.gmra.mxu1 %v2831_v6 }
 0x1ef   : > { %v1138_v62 = vadd.f32 %v1137_v4, %v1049_v28  ;;  %v1357_v10 = vmax.f32 %v1281_v46, 0.0 }
 0x1f1   : > { %v1384_v20 = vmax.f32 %v1138_v62, 0.0 }
 0x1f2   : > { %v1193_v63 = vpop.f32.mrf.mxu0 }
 0x1f3   : > { %v1194_v15 = vadd.f32 %v1193_v63, %v2890_v13  ;;  %v1282_v0 = vpop.f32.mrf.mxu1 }
 0x1f4   : > { %v1050_v49 = vpop.f32.mrf.mxu2 }
 0x1f5   : > { %v1283_v8 = vadd.f32 %v1282_v0, %v1194_v15  ;;  %v1051_v9 = vadd.f32 %v1050_v49, %v2758_v60  ;;  %v1139_v7 = vpop.f32.mrf.mxu3 }
 0x1f7   : > { %v1359_v30 = vmax.f32 %v1283_v8, 0.0  ;;  %v1140_v11 = vadd.f32 %v1139_v7, %v1051_v9 }
 0x1f9   : > { %v1413_v3 = vpack.c.bf16 %v1359_v30, %v1357_v10  ;;  %v1386_v14 = vmax.f32 %v1140_v11, 0.0  ;;  %1596 = vmatmul.bf16.gmra.mxu2 %v2857_v53 }
 0x1fa   : > { %v1196_v6 = vpop.f32.mrf.mxu0 }
 0x1fb   : > { %v1285_v21 = vpop.f32.mrf.mxu1  ;;  %1685 = vmatmul.bf16.gmra.mxu3 %v1413_v3  ;;  %v2937_v47 = vpack.c.bf16 %v1386_v14, %v1384_v20  ;;  %v1197_v61 = vadd.f32 %v1196_v6, %v2890_v13 }
 0x1fc   : > { %v1053_v18 = vpop.f32.mrf.mxu2 }
 0x1fd   : > { %v1054_v48 = vadd.f32 %v1053_v18, %v2758_v60  ;;  %v1142_v58 = vpop.f32.mrf.mxu3  ;;  %1235 = vmatmul.bf16.gmra.mxu0 %v2851_v43  ;;  %v1286_v59 = vadd.f32 %v1285_v21, %v1197_v61 }
 0x1fe   : > { %1324 = vmatmul.bf16.gmra.mxu1 %v2853_v44 }
 0x1ff   : > { %v1143_v19 = vadd.f32 %v1142_v58, %v1054_v48  ;;  %v1361_v2 = vmax.f32 %v1286_v59, 0.0 }
 0x201   : > { %v1388_v37 = vmax.f32 %v1143_v19, 0.0 }
 0x202   : > { %v1198_v31 = vpop.f32.mrf.mxu0 }
 0x203   : > { %v1199_v53 = vadd.f32 %v1198_v31, %v2890_v13  ;;  %v1287_v24 = vpop.f32.mrf.mxu1 }
 0x204   : > { %v1055_v26 = vpop.f32.mrf.mxu2 }
 0x205   : > { %v1288_v29 = vadd.f32 %v1287_v24, %v1199_v53  ;;  %v1056_v1 = vadd.f32 %v1055_v26, %v2758_v60  ;;  %v1144_v32 = vpop.f32.mrf.mxu3 }
 0x207   : > { %v1363_v40 = vmax.f32 %v1288_v29, 0.0  ;;  %v1145_v36 = vadd.f32 %v1144_v32, %v1056_v1 }
 0x209   : > { %v1415_v43 = vpack.c.bf16 %v1363_v40, %v1361_v2  ;;  %v1390_v34 = vmax.f32 %v1145_v36, 0.0  ;;  %1601 = vmatmul.bf16.gmra.mxu2 %v2873_v23 }
 0x20a   : > { %v1201_v44 = vpop.f32.mrf.mxu0 }
 0x20b   : > { %v1290_v38 = vpop.f32.mrf.mxu1  ;;  %1690 = vmatmul.bf16.gmra.mxu3 %v1415_v43  ;;  %v2946_v39 = vpack.c.bf16 %v1390_v34, %v1388_v37  ;;  %v1202_v41 = vadd.f32 %v1201_v44, %v2890_v13 }
 0x20c   : > { %v1058_v45 = vpop.f32.mrf.mxu2 }
 0x20d   : > { %v1059_v50 = vadd.f32 %v1058_v45, %v2758_v60  ;;  %v1147_v51 = vpop.f32.mrf.mxu3  ;;  %1240 = vmatmul.bf16.gmra.mxu0 %v2867_v16  ;;  %v1291_v52 = vadd.f32 %v1290_v38, %v1202_v41 }
 0x20e   : > { %1329 = vmatmul.bf16.gmra.mxu1 %v2869_v17 }
 0x20f   : > { %v1148_v33 = vadd.f32 %v1147_v51, %v1059_v50  ;;  %v1365_v62 = vmax.f32 %v1291_v52, 0.0  ;;  %v2974_v52 = vld [vmem:[%s3078_s6] ss:$0 sm:$0xff] }
 0x211   : > { %v1392_v15 = vmax.f32 %v1148_v33, 0.0 }
 0x212   : > { %v1203_v35 = vpop.f32.mrf.mxu0 }
 0x213   : > { %v1204_v23 = vadd.f32 %v1203_v35, %v2890_v13  ;;  %v1292_v42 = vpop.f32.mrf.mxu1 }
 0x214   : > { %v1060_v27 = vpop.f32.mrf.mxu2 }
 0x215   : > { %v1293_v28 = vadd.f32 %v1292_v42, %v1204_v23  ;;  %v1061_v4 = vadd.f32 %v1060_v27, %v2758_v60  ;;  %v1149_v12 = vpop.f32.mrf.mxu3 }
 0x217   : > { %v1367_v63 = vmax.f32 %v1293_v28, 0.0  ;;  %v1150_v46 = vadd.f32 %v1149_v12, %v1061_v4 }
 0x219   : > { %v1417_v16 = vpack.c.bf16 %v1367_v63, %v1365_v62  ;;  %v1394_v0 = vmax.f32 %v1150_v46, 0.0  ;;  %1606 = vmatmul.bf16.gmra.mxu2 %v2892_v5 }
 0x21a   : > { %v1206_v17 = vpop.f32.mrf.mxu0 }
 0x21b   : > { %v1295_v49 = vpop.f32.mrf.mxu1  ;;  %1695 = vmatmul.bf16.gmra.mxu3 %v1417_v16  ;;  %v2955_v8 = vpack.c.bf16 %v1394_v0, %v1392_v15  ;;  %v1207_v30 = vadd.f32 %v1206_v17, %v2890_v13 }
 0x21c   : > { %v1063_v9 = vpop.f32.mrf.mxu2 }
 0x21d   : > { %v1064_v7 = vadd.f32 %v1063_v9, %v2758_v60  ;;  %v1152_v10 = vpop.f32.mrf.mxu3  ;;  %1245 = vmatmul.bf16.gmra.mxu0 %v2883_v54  ;;  %v1296_v3 = vadd.f32 %v1295_v49, %v1207_v30 }
 0x21e   : > { %1334 = vmatmul.bf16.gmra.mxu1 %v2885_v55 }
 0x21f   : > { %v1153_v11 = vadd.f32 %v1152_v10, %v1064_v7  ;;  %v1369_v58 = vmax.f32 %v1296_v3, 0.0 }
 0x221   : > { %v1396_v31 = vmax.f32 %v1153_v11, 0.0 }
 0x222   : > { %v1208_v20 = vpop.f32.mrf.mxu0 }
 0x223   : > { %v1209_v5 = vadd.f32 %v1208_v20, %v2890_v13  ;;  %v1297_v14 = vpop.f32.mrf.mxu1 }
 0x224   : > { %v1065_v6 = vpop.f32.mrf.mxu2 }
 0x225   : > { %v1298_v21 = vadd.f32 %v1297_v14, %v1209_v5  ;;  %v1066_v18 = vadd.f32 %v1065_v6, %v2758_v60  ;;  %v1154_v48 = vpop.f32.mrf.mxu3 }
 0x227   : > { %v1371_v61 = vmax.f32 %v1298_v21, 0.0  ;;  %v1155_v19 = vadd.f32 %v1154_v48, %v1066_v18 }
 0x229   : > { %v1419_v54 = vpack.c.bf16 %v1371_v61, %v1369_v58  ;;  %v1398_v59 = vmax.f32 %v1155_v19, 0.0  ;;  %1611 = vmatmul.bf16.gmra.mxu2 %v2901_v25 }
 0x22a   : > { %v1211_v55 = vpop.f32.mrf.mxu0 }
 0x22b   : > { %v1300_v53 = vpop.f32.mrf.mxu1  ;;  %1700 = vmatmul.bf16.gmra.mxu3 %v1419_v54  ;;  %v2964_v24 = vpack.c.bf16 %v1398_v59, %v1396_v31  ;;  %v1212_v32 = vadd.f32 %v1211_v55, %v2890_v13 }
 0x22c   : > { %v1068_v26 = vpop.f32.mrf.mxu2 }
 0x22d   : > { %v1069_v29 = vadd.f32 %v1068_v26, %v2758_v60  ;;  %v1157_v1 = vpop.f32.mrf.mxu3  ;;  %v1301_v36 = vadd.f32 %v1300_v53, %v1212_v32 }
 0x22f   : > { %v1158_v2 = vadd.f32 %v1157_v1, %v1069_v29  ;;  %v1373_v45 = vmax.f32 %v1301_v36, 0.0 }
 0x231   : > { %v1400_v41 = vmax.f32 %v1158_v2, 0.0 }
 0x232   : > { %v1213_v40 = vpop.f32.mrf.mxu0 }
 0x233   : > { %v1214_v37 = vadd.f32 %v1213_v40, %v2890_v13  ;;  %v1302_v43 = vpop.f32.mrf.mxu1 }
 0x234   : > { %v1070_v34 = vpop.f32.mrf.mxu2 }
 0x235   : > { %v1303_v25 = vadd.f32 %v1302_v43, %v1214_v37  ;;  %v1071_v44 = vadd.f32 %v1070_v34, %v2758_v60  ;;  %v1159_v38 = vpop.f32.mrf.mxu3 }
 0x237   : > { %v1375_v50 = vmax.f32 %v1303_v25, 0.0  ;;  %v1160_v51 = vadd.f32 %v1159_v38, %v1071_v44 }
 0x239   : > { %v1421_v33 = vpack.c.bf16 %v1375_v50, %v1373_v45  ;;  %v1402_v35 = vmax.f32 %v1160_v51, 0.0  ;;  %1616 = vmatmul.bf16.gmra.mxu2 %v2910_v57 }
 0x23a   : > { %v1216_v23 = vpop.f32.mrf.mxu0 }
 0x23b   : > { %v1305_v42 = vpop.f32.mrf.mxu1  ;;  %1705 = vmatmul.bf16.gmra.mxu3 %v1421_v33  ;;  %v2977_v27 = vpack.c.bf16 %v1402_v35, %v1400_v41  ;;  %v1217_v4 = vadd.f32 %v1216_v23, %v2890_v13 }
 0x23c   : > { %v1577_v60 = vpop.f32.mrf.mxu2 }
 0x23d   : > { %v1578_v28 = vadd.f32 %v2974_v52, %v1577_v60  ;;  %v1306_v63 = vadd.f32 %v1305_v42, %v1217_v4 }
 0x23e   : > { %v1666_v57 = vpop.f32.mrf.mxu3 }
 0x23f   : > { %v1667_v12 = vadd.f32 %v1666_v57, %v1578_v28  ;;  %v1377_v9 = vmax.f32 %v1306_v63, 0.0 }
 0x241   : > { %1746 = vst [vmem:[%s2983_s16] sm:$0xff] %v1667_v12 }
 0x242   : > { %v1218_v62 = vpop.f32.mrf.mxu0 }
 0x243   : > { %v1219_v46 = vadd.f32 %v1218_v62, %v2890_v13  ;;  %v1307_v15 = vpop.f32.mrf.mxu1 }
 0x244   : > { %v1579_v16 = vpop.f32.mrf.mxu2 }
 0x245   : > { %v1308_v0 = vadd.f32 %v1307_v15, %v1219_v46  ;;  %v1580_v17 = vadd.f32 %v2974_v52, %v1579_v16 }
 0x246   : > { %v1668_v49 = vpop.f32.mrf.mxu3 }
 0x247   : > { %v1379_v7 = vmax.f32 %v1308_v0, 0.0  ;;  %v1669_v10 = vadd.f32 %v1668_v49, %v1580_v17 }
 0x249   : > { %v1423_v30 = vpack.c.bf16 %v1379_v7, %v1377_v9  ;;  %1747 = vst [vmem:[%s2983_s16 + $0x8] sm:$0xff] %v1669_v10  ;;  %1621 = vmatmul.bf16.gmra.mxu2 %v2919_v22 }
 0x24a   : > { %v1221_v11 = vpop.f32.mrf.mxu0 }
 0x24b   : > { %v1310_v20 = vpop.f32.mrf.mxu1  ;;  %1710 = vmatmul.bf16.gmra.mxu3 %v1423_v30  ;;  %v1222_v6 = vadd.f32 %v1221_v11, %v2890_v13 }
 0x24c   : > { %v1582_v3 = vpop.f32.mrf.mxu2 }
 0x24d   : > { %v1583_v5 = vadd.f32 %v2974_v52, %v1582_v3  ;;  %v1311_v48 = vadd.f32 %v1310_v20, %v1222_v6 }
 0x24e   : > { %v1671_v14 = vpop.f32.mrf.mxu3 }
 0x24f   : > { %v1672_v21 = vadd.f32 %v1671_v14, %v1583_v5  ;;  %v1381_v59 = vmax.f32 %v1311_v48, 0.0 }
 0x251   : > { %1748 = vst [vmem:[%s2983_s16 + $0x10] sm:$0xff] %v1672_v21 }
 0x252   : > { %v1223_v18 = vpop.f32.mrf.mxu0 }
 0x253   : > { %v1224_v58 = vadd.f32 %v1223_v18, %v2890_v13  ;;  %v1312_v61 = vpop.f32.mrf.mxu1 }
 0x254   : > { %v1584_v19 = vpop.f32.mrf.mxu2 }
 0x255   : > { %v1313_v31 = vadd.f32 %v1312_v61, %v1224_v58  ;;  %v1585_v22 = vadd.f32 %v2974_v52, %v1584_v19 }
 0x256   : > { %v1673_v54 = vpop.f32.mrf.mxu3 }
 0x257   : > { %v1383_v55 = vmax.f32 %v1313_v31, 0.0  ;;  %v1674_v53 = vadd.f32 %v1673_v54, %v1585_v22 }
 0x259   : > { %v1425_v26 = vpack.c.bf16 %v1383_v55, %v1381_v59  ;;  %1749 = vst [vmem:[%s2983_s16 + $0x18] sm:$0xff] %v1674_v53  ;;  %1626 = vmatmul.bf16.gmra.mxu2 %v2928_v56 }
 0x25a   : > { %v1226_v29 = vpop.f32.mrf.mxu0 }
 0x25b   : > { %v1315_v1 = vpop.f32.mrf.mxu1  ;;  %1715 = vmatmul.bf16.gmra.mxu3 %v1425_v26  ;;  %v1227_v36 = vadd.f32 %v1226_v29, %v2890_v13 }
 0x25c   : > { %v1587_v32 = vpop.f32.mrf.mxu2 }
 0x25d   : > { %v1588_v2 = vadd.f32 %v2974_v52, %v1587_v32  ;;  %v1316_v34 = vadd.f32 %v1315_v1, %v1227_v36 }
 0x25e   : > { %v1676_v40 = vpop.f32.mrf.mxu3 }
 0x25f   : > { %v1677_v37 = vadd.f32 %v1676_v40, %v1588_v2  ;;  %v1385_v51 = vmax.f32 %v1316_v34, 0.0 }
 0x261   : > { %1750 = vst [vmem:[%s2983_s16 + $0x20] sm:$0xff] %v1677_v37 }
 0x262   : > { %v1228_v43 = vpop.f32.mrf.mxu0 }
 0x263   : > { %v1229_v25 = vadd.f32 %v1228_v43, %v2890_v13  ;;  %v1317_v44 = vpop.f32.mrf.mxu1 }
 0x264   : > { %v1589_v38 = vpop.f32.mrf.mxu2 }
 0x265   : > { %v1318_v45 = vadd.f32 %v1317_v44, %v1229_v25  ;;  %v1590_v56 = vadd.f32 %v2974_v52, %v1589_v38 }
 0x266   : > { %v1678_v50 = vpop.f32.mrf.mxu3 }
 0x267   : > { %v1387_v41 = vmax.f32 %v1318_v45, 0.0  ;;  %v1679_v33 = vadd.f32 %v1678_v50, %v1590_v56 }
 0x269   : > { %v1427_v35 = vpack.c.bf16 %v1387_v41, %v1385_v51  ;;  %1751 = vst [vmem:[%s2983_s16 + $0x28] sm:$0xff] %v1679_v33  ;;  %1631 = vmatmul.bf16.gmra.mxu2 %v2937_v47 }
 0x26a   : > { %v1231_v23 = vpop.f32.mrf.mxu0 }
 0x26b   : > { %v1320_v42 = vpop.f32.mrf.mxu1  ;;  %1720 = vmatmul.bf16.gmra.mxu3 %v1427_v35  ;;  %v1232_v4 = vadd.f32 %v1231_v23, %v2890_v13 }
 0x26c   : > { %v1592_v60 = vpop.f32.mrf.mxu2 }
 0x26d   : > { %v1593_v28 = vadd.f32 %v2974_v52, %v1592_v60  ;;  %v1321_v63 = vadd.f32 %v1320_v42, %v1232_v4 }
 0x26e   : > { %v1681_v57 = vpop.f32.mrf.mxu3 }
 0x26f   : > { %v1682_v12 = vadd.f32 %v1681_v57, %v1593_v28  ;;  %v1389_v49 = vmax.f32 %v1321_v63, 0.0 }
 0x271   : > { %1752 = vst [vmem:[%s2983_s16 + $0x30] sm:$0xff] %v1682_v12 }
 0x272   : > { %v1233_v62 = vpop.f32.mrf.mxu0 }
 0x273   : > { %v1234_v46 = vadd.f32 %v1233_v62, %v2890_v13  ;;  %v1322_v15 = vpop.f32.mrf.mxu1 }
 0x274   : > { %v1594_v16 = vpop.f32.mrf.mxu2 }
 0x275   : > { %v1323_v0 = vadd.f32 %v1322_v15, %v1234_v46  ;;  %v1595_v47 = vadd.f32 %v2974_v52, %v1594_v16 }
 0x276   : > { %v1683_v17 = vpop.f32.mrf.mxu3 }
 0x277   : > { %v1391_v9 = vmax.f32 %v1323_v0, 0.0  ;;  %v1684_v7 = vadd.f32 %v1683_v17, %v1595_v47 }
 0x279   : > { %v1429_v10 = vpack.c.bf16 %v1391_v9, %v1389_v49  ;;  %1753 = vst [vmem:[%s2983_s16 + $0x38] sm:$0xff] %v1684_v7  ;;  %1636 = vmatmul.bf16.gmra.mxu2 %v2946_v39 }
 0x27a   : > { %v1236_v30 = vpop.f32.mrf.mxu0 }
 0x27b   : > { %v1325_v11 = vpop.f32.mrf.mxu1  ;;  %1725 = vmatmul.bf16.gmra.mxu3 %v1429_v10  ;;  %v1237_v14 = vadd.f32 %v1236_v30, %v2890_v13 }
 0x27c   : > { %v1597_v20 = vpop.f32.mrf.mxu2 }
 0x27d   : > { %v1598_v3 = vadd.f32 %v2974_v52, %v1597_v20  ;;  %v1326_v18 = vadd.f32 %v1325_v11, %v1237_v14 }
 0x27e   : > { %v1686_v5 = vpop.f32.mrf.mxu3 }
 0x27f   : > { %v1687_v6 = vadd.f32 %v1686_v5, %v1598_v3  ;;  %v1393_v22 = vmax.f32 %v1326_v18, 0.0 }
 0x281   : > { %1754 = vst [vmem:[%s2983_s16 + $0x40] sm:$0xff] %v1687_v6 }
 0x282   : > { %v1238_v21 = vpop.f32.mrf.mxu0 }
 0x283   : > { %v1239_v48 = vadd.f32 %v1238_v21, %v2890_v13  ;;  %v1327_v58 = vpop.f32.mrf.mxu1 }
 0x284   : > { %v1599_v61 = vpop.f32.mrf.mxu2 }
 0x285   : > { %v1328_v19 = vadd.f32 %v1327_v58, %v1239_v48  ;;  %v1600_v39 = vadd.f32 %v2974_v52, %v1599_v61 }
 0x286   : > { %v1688_v31 = vpop.f32.mrf.mxu3 }
 0x287   : > { %v1395_v54 = vmax.f32 %v1328_v19, 0.0  ;;  %v1689_v59 = vadd.f32 %v1688_v31, %v1600_v39 }
 0x289   : > { %v1431_v55 = vpack.c.bf16 %v1395_v54, %v1393_v22  ;;  %1755 = vst [vmem:[%s2983_s16 + $0x48] sm:$0xff] %v1689_v59  ;;  %1641 = vmatmul.bf16.gmra.mxu2 %v2955_v8 }
 0x28a   : > { %v1241_v53 = vpop.f32.mrf.mxu0 }
 0x28b   : > { %v1330_v26 = vpop.f32.mrf.mxu1  ;;  %1730 = vmatmul.bf16.gmra.mxu3 %v1431_v55  ;;  %v1242_v2 = vadd.f32 %v1241_v53, %v2890_v13 }
 0x28c   : > { %v1602_v29 = vpop.f32.mrf.mxu2 }
 0x28d   : > { %v1603_v1 = vadd.f32 %v2974_v52, %v1602_v29  ;;  %v1331_v37 = vadd.f32 %v1330_v26, %v1242_v2 }
 0x28e   : > { %v1691_v32 = vpop.f32.mrf.mxu3 }
 0x28f   : > { %v1692_v40 = vadd.f32 %v1691_v32, %v1603_v1  ;;  %v1397_v45 = vmax.f32 %v1331_v37, 0.0 }
 0x291   : > { %1756 = vst [vmem:[%s2983_s16 + $0x50] sm:$0xff] %v1692_v40 }
 0x292   : > { %v1243_v36 = vpop.f32.mrf.mxu0 }
 0x293   : > { %v1244_v43 = vadd.f32 %v1243_v36, %v2890_v13  ;;  %v1332_v34 = vpop.f32.mrf.mxu1 }
 0x294   : > { %v1604_v25 = vpop.f32.mrf.mxu2 }
 0x295   : > { %v1333_v44 = vadd.f32 %v1332_v34, %v1244_v43  ;;  %v1605_v8 = vadd.f32 %v2974_v52, %v1604_v25 }
 0x296   : > { %v1693_v38 = vpop.f32.mrf.mxu3 }
 0x297   : > { %v1399_v56 = vmax.f32 %v1333_v44, 0.0  ;;  %v1694_v50 = vadd.f32 %v1693_v38, %v1605_v8 }
 0x299   : > { %v1433_v51 = vpack.c.bf16 %v1399_v56, %v1397_v45  ;;  %1757 = vst [vmem:[%s2983_s16 + $0x58] sm:$0xff] %v1694_v50  ;;  %1646 = vmatmul.bf16.gmra.mxu2 %v2964_v24 }
 0x29a   : > { %v1246_v41 = vpop.f32.mrf.mxu0 }
 0x29b   : > { %v1335_v33 = vpop.f32.mrf.mxu1  ;;  %1735 = vmatmul.bf16.gmra.mxu3 %v1433_v51  ;;  %v1247_v60 = vadd.f32 %v1246_v41, %v2890_v13 }
 0x29c   : > { %v1607_v35 = vpop.f32.mrf.mxu2 }
 0x29d   : > { %v1608_v23 = vadd.f32 %v2974_v52, %v1607_v35  ;;  %v1336_v4 = vadd.f32 %v1335_v33, %v1247_v60 }
 0x29e   : > { %v1696_v42 = vpop.f32.mrf.mxu3 }
 0x29f   : > { %v1697_v28 = vadd.f32 %v1696_v42, %v1608_v23  ;;  %v1401_v16 = vmax.f32 %v1336_v4, 0.0 }
 0x2a1   : > { %1758 = vst [vmem:[%s2983_s16 + $0x60] sm:$0xff] %v1697_v28 }
 0x2a2   : > { %v1248_v57 = vpop.f32.mrf.mxu0 }
 0x2a3   : > { %v1249_v12 = vadd.f32 %v1248_v57, %v2890_v13  ;;  %v1337_v62 = vpop.f32.mrf.mxu1 }
 0x2a4   : > { %v1609_v63 = vpop.f32.mrf.mxu2 }
 0x2a5   : > { %v1338_v24 = vadd.f32 %v1337_v62, %v1249_v12  ;;  %v1610_v46 = vadd.f32 %v2974_v52, %v1609_v63 }
 0x2a6   : > { %v1698_v15 = vpop.f32.mrf.mxu3 }
 0x2a7   : > { %v1403_v0 = vmax.f32 %v1338_v24, 0.0  ;;  %v1699_v47 = vadd.f32 %v1698_v15, %v1610_v46 }
 0x2a9   : > { %v1435_v17 = vpack.c.bf16 %v1403_v0, %v1401_v16  ;;  %1759 = vst [vmem:[%s2983_s16 + $0x68] sm:$0xff] %v1699_v47  ;;  %1651 = vmatmul.bf16.gmra.mxu2 %v2977_v27 }
 0x2ab   : > { %1740 = vmatmul.bf16.gmra.mxu3 %v1435_v17 }
 0x2ac   : > { %v1612_v49 = vpop.f32.mrf.mxu2 }
 0x2ad   : > { %v1613_v13 = vadd.f32 %v2974_v52, %v1612_v49 }
 0x2ae   : > { %v1701_v9 = vpop.f32.mrf.mxu3 }
 0x2af   : > { %v1702_v7 = vadd.f32 %v1701_v9, %v1613_v13 }
 0x2b1   : > { %1760 = vst [vmem:[%s2983_s16 + $0x70] sm:$0xff] %v1702_v7 }
 0x2b4   : > { %v1614_v10 = vpop.f32.mrf.mxu2 }
 0x2b5   : > { %v1615_v30 = vadd.f32 %v2974_v52, %v1614_v10 }
 0x2b6   : > { %v1703_v11 = vpop.f32.mrf.mxu3 }
 0x2b7   : > { %v1704_v20 = vadd.f32 %v1703_v11, %v1615_v30 }
 0x2b9   : > { %1761 = vst [vmem:[%s2983_s16 + $0x78] sm:$0xff] %v1704_v20 }
 0x2bc   : > { %v1617_v3 = vpop.f32.mrf.mxu2 }
 0x2bd   : > { %v1618_v5 = vadd.f32 %v2974_v52, %v1617_v3 }
 0x2be   : > { %v1706_v27 = vpop.f32.mrf.mxu3 }
 0x2bf   : > { %v1707_v14 = vadd.f32 %v1706_v27, %v1618_v5 }
 0x2c1   : > { %1762 = vst [vmem:[%s2983_s16 + $0x80] sm:$0xff] %v1707_v14 }
 0x2c4   : > { %v1619_v6 = vpop.f32.mrf.mxu2 }
 0x2c5   : > { %v1620_v21 = vadd.f32 %v2974_v52, %v1619_v6 }
 0x2c6   : > { %v1708_v18 = vpop.f32.mrf.mxu3 }
 0x2c7   : > { %v1709_v48 = vadd.f32 %v1708_v18, %v1620_v21 }
 0x2c9   : > { %1763 = vst [vmem:[%s2983_s16 + $0x88] sm:$0xff] %v1709_v48 }
 0x2cc   : > { %v1622_v58 = vpop.f32.mrf.mxu2 }
 0x2cd   : > { %v1623_v61 = vadd.f32 %v2974_v52, %v1622_v58 }
 0x2ce   : > { %v1711_v19 = vpop.f32.mrf.mxu3 }
 0x2cf   : > { %v1712_v39 = vadd.f32 %v1711_v19, %v1623_v61 }
 0x2d1   : > { %1764 = vst [vmem:[%s2983_s16 + $0x90] sm:$0xff] %v1712_v39 }
 0x2d4   : > { %v1624_v31 = vpop.f32.mrf.mxu2 }
 0x2d5   : > { %v1625_v22 = vadd.f32 %v2974_v52, %v1624_v31 }
 0x2d6   : > { %v1713_v54 = vpop.f32.mrf.mxu3 }
 0x2d7   : > { %v1714_v59 = vadd.f32 %v1713_v54, %v1625_v22 }
 0x2d9   : > { %1765 = vst [vmem:[%s2983_s16 + $0x98] sm:$0xff] %v1714_v59 }
 0x2dc   : > { %v1627_v55 = vpop.f32.mrf.mxu2 }
 0x2dd   : > { %v1628_v53 = vadd.f32 %v2974_v52, %v1627_v55 }
 0x2de   : > { %v1716_v26 = vpop.f32.mrf.mxu3 }
 0x2df   : > { %v1717_v29 = vadd.f32 %v1716_v26, %v1628_v53 }
 0x2e1   : > { %1766 = vst [vmem:[%s2983_s16 + $0xa0] sm:$0xff] %v1717_v29 }
 0x2e4   : > { %v1629_v1 = vpop.f32.mrf.mxu2 }
 0x2e5   : > { %v1630_v32 = vadd.f32 %v2974_v52, %v1629_v1 }
 0x2e6   : > { %v1718_v2 = vpop.f32.mrf.mxu3 }
 0x2e7   : > { %v1719_v40 = vadd.f32 %v1718_v2, %v1630_v32 }
 0x2e9   : > { %1767 = vst [vmem:[%s2983_s16 + $0xa8] sm:$0xff] %v1719_v40 }
 0x2ec   : > { %v1632_v36 = vpop.f32.mrf.mxu2 }
 0x2ed   : > { %v1633_v37 = vadd.f32 %v2974_v52, %v1632_v36 }
 0x2ee   : > { %v1721_v43 = vpop.f32.mrf.mxu3 }
 0x2ef   : > { %v1722_v34 = vadd.f32 %v1721_v43, %v1633_v37 }
 0x2f1   : > { %1768 = vst [vmem:[%s2983_s16 + $0xb0] sm:$0xff] %v1722_v34 }
 0x2f4   : > { %v1634_v25 = vpop.f32.mrf.mxu2 }
 0x2f5   : > { %v1635_v44 = vadd.f32 %v2974_v52, %v1634_v25 }
 0x2f6   : > { %v1723_v8 = vpop.f32.mrf.mxu3 }
 0x2f7   : > { %v1724_v38 = vadd.f32 %v1723_v8, %v1635_v44 }
 0x2f9   : > { %1769 = vst [vmem:[%s2983_s16 + $0xb8] sm:$0xff] %v1724_v38 }
 0x2fc   : > { %v1637_v45 = vpop.f32.mrf.mxu2 }
 0x2fd   : > { %v1638_v56 = vadd.f32 %v2974_v52, %v1637_v45 }
 0x2fe   : > { %v1726_v50 = vpop.f32.mrf.mxu3 }
 0x2ff   : > { %v1727_v51 = vadd.f32 %v1726_v50, %v1638_v56 }
 0x301   : > { %1770 = vst [vmem:[%s2983_s16 + $0xc0] sm:$0xff] %v1727_v51 }
 0x304   : > { %v1639_v41 = vpop.f32.mrf.mxu2 }
 0x305   : > { %v1640_v33 = vadd.f32 %v2974_v52, %v1639_v41 }
 0x306   : > { %v1728_v35 = vpop.f32.mrf.mxu3 }
 0x307   : > { %v1729_v23 = vadd.f32 %v1728_v35, %v1640_v33 }
 0x309   : > { %1771 = vst [vmem:[%s2983_s16 + $0xc8] sm:$0xff] %v1729_v23 }
 0x30c   : > { %v1642_v42 = vpop.f32.mrf.mxu2 }
 0x30d   : > { %v1643_v60 = vadd.f32 %v2974_v52, %v1642_v42 }
 0x30e   : > { %v1731_v28 = vpop.f32.mrf.mxu3 }
 0x30f   : > { %v1732_v57 = vadd.f32 %v1731_v28, %v1643_v60 }
 0x311   : > { %1772 = vst [vmem:[%s2983_s16 + $0xd0] sm:$0xff] %v1732_v57 }
 0x314   : > { %v1644_v4 = vpop.f32.mrf.mxu2 }
 0x315   : > { %v1645_v12 = vadd.f32 %v2974_v52, %v1644_v4 }
 0x316   : > { %v1733_v62 = vpop.f32.mrf.mxu3 }
 0x317   : > { %v1734_v63 = vadd.f32 %v1733_v62, %v1645_v12 }
 0x319   : > { %1773 = vst [vmem:[%s2983_s16 + $0xd8] sm:$0xff] %v1734_v63 }
 0x31c   : > { %v1647_v24 = vpop.f32.mrf.mxu2 }
 0x31d   : > { %v1648_v46 = vadd.f32 %v2974_v52, %v1647_v24 }
 0x31e   : > { %v1736_v15 = vpop.f32.mrf.mxu3 }
 0x31f   : > { %v1737_v16 = vadd.f32 %v1736_v15, %v1648_v46 }
 0x321   : > { %1774 = vst [vmem:[%s2983_s16 + $0xe0] sm:$0xff] %v1737_v16 }
 0x324   : > { %v1649_v0 = vpop.f32.mrf.mxu2 }
 0x325   : > { %v1650_v47 = vadd.f32 %v2974_v52, %v1649_v0 }
 0x326   : > { %v1738_v17 = vpop.f32.mrf.mxu3 }
 0x327   : > { %v1739_v49 = vadd.f32 %v1738_v17, %v1650_v47 }
 0x329   : > { %1775 = vst [vmem:[%s2983_s16 + $0xe8] sm:$0xff] %v1739_v49 }
 0x32c   : > { %v1652_v13 = vpop.f32.mrf.mxu2 }
 0x32d   : > { %v1653_v9 = vadd.f32 %v2974_v52, %v1652_v13 }
 0x32e   : > { %v1741_v7 = vpop.f32.mrf.mxu3 }
 0x32f   : > { %v1742_v10 = vadd.f32 %v1741_v7, %v1653_v9 }
 0x331   : > { %1776 = vst [vmem:[%s2983_s16 + $0xf0] sm:$0xff] %v1742_v10 }
 0x334   : > { %v1654_v30 = vpop.f32.mrf.mxu2 }
 0x335   : > { %v1655_v11 = vadd.f32 %v2974_v52, %v1654_v30 }
 0x336   : > { %v1743_v20 = vpop.f32.mrf.mxu3 }
 0x337   : > { %v1744_v3 = vadd.f32 %v1743_v20, %v1655_v11 }
 0x339   : > { %1777 = vst [vmem:[%s2983_s16 + $0xf8] sm:$0xff] %v1744_v3 }
 0x33a PF: > { %s17_s24 = sadd.s32 1, %s2260_s24  }
 0x33b   : > { %p14_p4 = scmp.ge.s32.totalorder %s17_s24, 4  }
 0x33d   :  { %16 = sbr.rel (!%p14_p4) target bundleno = 1 (0x1), region = 78 }

</bundles_post_ra>
